<compile_context>
chip_gen: v6e
topology: v6e:2x2x1
jax: 0.10.0
libtpu: 0.0.40
codegen_flags: <defaults>
</compile_context>

<pallas_src>
import functools

import jax
import jax.numpy as jnp
from jax.experimental import pallas as pl
from jax.experimental.pallas import tpu as pltpu

_LANE = 128
_SUBLANE = 8


def _round_up(v, m):
    return ((v + m - 1) // m) * m


def _lstm_kernel(x_ref, wih_ref, whh_ref, b_ref, wout_ref, out_ref, xw_ref, *, n_out):
    """One grid step == one batch block; full time recurrence runs inside."""
    S, Bb, Dp = x_ref.shape
    Hp = whh_ref.shape[0]

    # --- 1) Hoisted input projection: one big batched MXU matmul + bias (f32).
    x2d = x_ref[...].reshape(S * Bb, Dp)                                  # bf16
    xw = jnp.dot(x2d, wih_ref[...], preferred_element_type=jnp.float32)  # (S*Bb, 4Hp)
    xw_ref[...] = xw.reshape(S, Bb, 4 * Hp) + b_ref[...]                 # f32 scratch

    whh = whh_ref[...]                                                    # (Hp, 4Hp) bf16

    # --- 2) Serial recurrence: only h @ W_hh^T per step; state in f32.
    def step(t, carry):
        h, c = carry
        gates = xw_ref[t] + jnp.dot(h.astype(whh.dtype), whh,
                                    preferred_element_type=jnp.float32)   # (Bb, 4Hp)
        # Hp % 128 == 0 -> each gate slice is lane-tile aligned (free view).
        i = jax.nn.sigmoid(gates[:, 0 * Hp:1 * Hp])
        f = jax.nn.sigmoid(gates[:, 1 * Hp:2 * Hp])
        g = jnp.tanh(gates[:, 2 * Hp:3 * Hp])
        o = jax.nn.sigmoid(gates[:, 3 * Hp:4 * Hp])
        c_new = f * c + i * g
        h_new = o * jnp.tanh(c_new)
        return h_new, c_new

    h0 = jnp.zeros((Bb, Hp), jnp.float32)
    c0 = jnp.zeros((Bb, Hp), jnp.float32)
    h, _ = jax.lax.fori_loop(0, S, step, (h0, c0), unroll=True)

    # --- 3) Linear (no bias) + softmax over the n_out real columns (rest is pad).
    logits = jnp.dot(h.astype(wout_ref.dtype), wout_ref[...],
                     preferred_element_type=jnp.float32)                  # (Bb, Op)
    col = jax.lax.broadcasted_iota(jnp.int32, logits.shape, 1)
    logits = jnp.where(col < n_out, logits, -1e30)
    m = jnp.max(logits, axis=-1, keepdims=True)
    e = jnp.exp(logits - m)
    denom = jnp.sum(e, axis=-1, keepdims=True)
    out_ref[...] = (e * pl.reciprocal(denom, approx=True)).astype(out_ref.dtype)


def lstm_net_forward(x, w_ih, w_hh, b_ih, b_hh, w_out):
    """x: (S, B, D) f32.  Returns softmax(Linear(LSTM(x)[-1])) of shape (B, O)."""
    S, B, D = x.shape
    H = w_ih.shape[0] // 4
    O = w_out.shape[0]

    # Lane/sublane-aligned padded sizes.
    Hp = _round_up(H, _LANE)
    Dp = _round_up(D, _LANE)
    Op = _round_up(O, _LANE)
    Bb = _LANE if B > _LANE else _round_up(B, _SUBLANE)   # batch block (grid axis)
    Bp = _round_up(B, Bb)

    f32 = jnp.float32
    w_ih = jnp.asarray(w_ih, f32)
    w_hh = jnp.asarray(w_hh, f32)
    bias = jnp.asarray(b_ih, f32) + jnp.asarray(b_hh, f32)
    w_out = jnp.asarray(w_out, f32)

    # Zero-pad each gate block to Hp so gate k lives at columns [k*Hp, (k+1)*Hp).
    # Padded gate columns get gates == 0 -> i=f=o=0.5, g=0; with h0=c0=0 the
    # padded state stays exactly 0 and never perturbs the real lanes.
    def pad_gate_rows(w, in_dim, in_pad):
        w = w.reshape(4, H, in_dim)
        w = jnp.pad(w, ((0, 0), (0, Hp - H), (0, in_pad - in_dim)))
        return w.reshape(4 * Hp, in_pad)

    wih_t = pad_gate_rows(w_ih, D, Dp).T.astype(jnp.bfloat16)   # (Dp, 4Hp)
    whh_t = pad_gate_rows(w_hh, H, Hp).T.astype(jnp.bfloat16)   # (Hp, 4Hp)
    bias_p = jnp.pad(bias.reshape(4, H), ((0, 0), (0, Hp - H))).reshape(1, 4 * Hp)
    wout_t = jnp.pad(w_out, ((0, Op - O), (0, Hp - H))).T.astype(jnp.bfloat16)  # (Hp, Op)
    x_p = jnp.pad(jnp.asarray(x, f32),
                  ((0, 0), (0, Bp - B), (0, Dp - D))).astype(jnp.bfloat16)      # (S, Bp, Dp)

    out_padded = pl.pallas_call(
        functools.partial(_lstm_kernel, n_out=O),
        out_shape=jax.ShapeDtypeStruct((Bp, Op), jnp.float32),
        grid_spec=pltpu.PrefetchScalarGridSpec(
            num_scalar_prefetch=0,
            grid=(Bp // Bb,),                                   # independent batch blocks
            in_specs=[
                pl.BlockSpec((S, Bb, Dp), lambda bi: (0, bi, 0)),     # x batch block
                pl.BlockSpec((Dp, 4 * Hp), lambda bi: (0, 0)),        # W_ih^T (resident)
                pl.BlockSpec((Hp, 4 * Hp), lambda bi: (0, 0)),        # W_hh^T (resident)
                pl.BlockSpec((1, 4 * Hp), lambda bi: (0, 0)),         # bias   (resident)
                pl.BlockSpec((Hp, Op), lambda bi: (0, 0)),            # W_out^T (resident)
            ],
            out_specs=pl.BlockSpec((Bb, Op), lambda bi: (bi, 0)),
            scratch_shapes=[
                pltpu.VMEM((S, Bb, 4 * Hp), jnp.float32),             # precomputed x-proj
            ],
        ),
        compiler_params=pltpu.CompilerParams(
            dimension_semantics=("parallel",),   # batch blocks independent (v7x 2-TC split)
        ),
    )(x_p, wih_t, whh_t, bias_p, wout_t)

    return out_padded[:B, :O]


def _reference_forward(x, w_ih, w_hh, b_ih, b_hh, w_out):
    """Pure-JAX f32 reference of the PyTorch forward, for a correctness check."""
    S, B, D = x.shape
    H = w_hh.shape[1]
    h = jnp.zeros((B, H), jnp.float32)
    c = jnp.zeros((B, H), jnp.float32)
    for t in range(S):
        gates = x[t] @ w_ih.T + b_ih + h @ w_hh.T + b_hh
        i = jax.nn.sigmoid(gates[:, 0 * H:1 * H])
        f = jax.nn.sigmoid(gates[:, 1 * H:2 * H])
        g = jnp.tanh(gates[:, 2 * H:3 * H])
        o = jax.nn.sigmoid(gates[:, 3 * H:4 * H])
        c = f * c + i * g
        h = o * jnp.tanh(c)
    logits = h @ w_out.T
    return jax.nn.softmax(logits, axis=-1)


if __name__ == "__main__":
    # Small shapes consistent with the module's forward: x is (seq, batch, input_dim).
    S, B, D, H, O = 8, 2, 16, 32, 4

    key = jax.random.PRNGKey(0)
    ks = jax.random.split(key, 6)
    bound = 1.0 / (H ** 0.5)   # PyTorch default LSTM/Linear init range
    x = jax.random.normal(ks[0], (S, B, D), dtype=jnp.float32)
    w_ih = jax.random.uniform(ks[1], (4 * H, D), minval=-bound, maxval=bound)
    w_hh = jax.random.uniform(ks[2], (4 * H, H), minval=-bound, maxval=bound)
    b_ih = jax.random.uniform(ks[3], (4 * H,), minval=-bound, maxval=bound)
    b_hh = jax.random.uniform(ks[4], (4 * H,), minval=-bound, maxval=bound)
    w_out = jax.random.uniform(ks[5], (O, H), minval=-bound, maxval=bound)

    out = lstm_net_forward(x, w_ih, w_hh, b_ih, b_hh, w_out)
    out = jax.block_until_ready(out)

    ref = _reference_forward(x, w_ih, w_hh, b_ih, b_hh, w_out)
    assert out.shape == (B, O), out.shape
    # bf16 weights + approx reciprocal -> loosened tolerance vs the f32 reference.
    assert jnp.allclose(out, ref, atol=2e-2, rtol=2e-2), (out, ref)
    assert jnp.allclose(jnp.sum(out, axis=-1), 1.0, atol=2e-2)

    print("KERNEL_OK")
</pallas_src>

<mosaic_0001>
module attributes {stable_mosaic.version = 11 : i64} {
  func.func @_lstm_kernel(%arg0: i32, %arg1: memref<8x8x128xbf16, #tpu.memory_space<vmem>>, %arg2: memref<128x512xbf16, #tpu.memory_space<vmem>>, %arg3: memref<128x512xbf16, #tpu.memory_space<vmem>>, %arg4: memref<1x512xf32, #tpu.memory_space<vmem>>, %arg5: memref<128x128xbf16, #tpu.memory_space<vmem>>, %arg6: memref<8x128xf32, #tpu.memory_space<vmem>>, %arg7: memref<8x8x512xf32, #tpu.memory_space<vmem>>) attributes {dimension_semantics = [#tpu.dimension_semantics<parallel>], iteration_bounds = array<i64: 1>, scalar_prefetch = 0 : i64, scratch_operands = 1 : i64, tpu.core_type = #tpu.core_type<tc>, window_params = [{transform_indices = @transform_0, window_bounds = array<i64: 8, 8, 128>}, {pipeline_mode = #tpu.pipeline_mode<synchronous>, transform_indices = @transform_1, window_bounds = array<i64: 128, 512>}, {pipeline_mode = #tpu.pipeline_mode<synchronous>, transform_indices = @transform_2, window_bounds = array<i64: 128, 512>}, {pipeline_mode = #tpu.pipeline_mode<synchronous>, transform_indices = @transform_3, window_bounds = array<i64: 1, 512>}, {pipeline_mode = #tpu.pipeline_mode<synchronous>, transform_indices = @transform_4, window_bounds = array<i64: 128, 128>}, {transform_indices = @transform_5, window_bounds = array<i64: 8, 128>}]} {
    %c0 = arith.constant 0 : index
    %c0_0 = arith.constant 0 : index
    %c0_1 = arith.constant 0 : index
    %0 = vector.load %arg1[%c0, %c0_0, %c0_1] : memref<8x8x128xbf16, #tpu.memory_space<vmem>>, vector<8x8x128xbf16>
    %1 = vector.shape_cast %0 : vector<8x8x128xbf16> to vector<64x128xbf16>
    %c0_2 = arith.constant 0 : index
    %c0_3 = arith.constant 0 : index
    %2 = vector.load %arg2[%c0_2, %c0_3] : memref<128x512xbf16, #tpu.memory_space<vmem>>, vector<128x512xbf16>
    %cst = arith.constant dense<0.000000e+00> : vector<64x512xf32>
    %3 = tpu.matmul %1, %2, %cst {dimension_numbers = #tpu.dot_dimension_numbers<[1], [0], [0], [1], [0, 0, 1, 1], [], []>} : vector<64x128xbf16>, vector<128x512xbf16>, vector<64x512xf32> -> vector<64x512xf32>
    %4 = vector.shape_cast %3 : vector<64x512xf32> to vector<8x8x512xf32>
    %c0_4 = arith.constant 0 : index
    %c0_5 = arith.constant 0 : index
    %5 = vector.load %arg4[%c0_4, %c0_5] : memref<1x512xf32, #tpu.memory_space<vmem>>, vector<1x512xf32>
    %6 = vector.shape_cast %5 : vector<1x512xf32> to vector<1x1x512xf32>
    %7 = vector.broadcast %6 : vector<1x1x512xf32> to vector<8x8x512xf32>
    %8 = arith.addf %4, %7 : vector<8x8x512xf32>
    %c0_6 = arith.constant 0 : index
    %c0_7 = arith.constant 0 : index
    %c0_8 = arith.constant 0 : index
    %9 = vector.load %arg7[%c0_6, %c0_7, %c0_8] : memref<8x8x512xf32, #tpu.memory_space<vmem>>, vector<8x8x512xf32>
    tpu.vector_store %arg7[%c0_6, %c0_7, %c0_8], %8 {strides = array<i32>} : memref<8x8x512xf32, #tpu.memory_space<vmem>>, vector<8x8x512xf32>,
    %c0_9 = arith.constant 0 : index
    %c0_10 = arith.constant 0 : index
    %10 = vector.load %arg3[%c0_9, %c0_10] : memref<128x512xbf16, #tpu.memory_space<vmem>>, vector<128x512xbf16>
    %cst_11 = arith.constant 0.000000e+00 : f32
    %11 = vector.broadcast %cst_11 : f32 to vector<8x128xf32>
    %cst_12 = arith.constant 0.000000e+00 : f32
    %12 = vector.broadcast %cst_12 : f32 to vector<8x128xf32>
    %c0_i32 = arith.constant 0 : i32
    %13 = arith.index_cast %c0_i32 : i32 to index
    %c0_13 = arith.constant 0 : index
    %c0_14 = arith.constant 0 : index
    %14 = vector.load %arg7[%13, %c0_13, %c0_14] : memref<8x8x512xf32, #tpu.memory_space<vmem>>, vector<1x8x512xf32>
    %15 = vector.shape_cast %14 : vector<1x8x512xf32> to vector<8x512xf32>
    %16 = arith.truncf %11 : vector<8x128xf32> to vector<8x128xbf16>
    %cst_15 = arith.constant dense<0.000000e+00> : vector<8x512xf32>
    %17 = tpu.matmul %16, %10, %cst_15 {dimension_numbers = #tpu.dot_dimension_numbers<[1], [0], [0], [1], [0, 0, 1, 1], [], []>} : vector<8x128xbf16>, vector<128x512xbf16>, vector<8x512xf32> -> vector<8x512xf32>
    %18 = arith.addf %15, %17 : vector<8x512xf32>
    %19 = vector.extract_strided_slice %18 {offsets = [0, 0], sizes = [8, 128], strides = [1, 1]} : vector<8x512xf32> to vector<8x128xf32>
    %20 = arith.negf %19 : vector<8x128xf32>
    %21 = math.exp %20 : vector<8x128xf32>
    %cst_16 = arith.constant 1.000000e+00 : f32
    %22 = vector.broadcast %cst_16 : f32 to vector<8x128xf32>
    %23 = arith.addf %22, %21 : vector<8x128xf32>
    %24 = arith.divf %22, %23 : vector<8x128xf32>
    %25 = vector.extract_strided_slice %18 {offsets = [0, 128], sizes = [8, 128], strides = [1, 1]} : vector<8x512xf32> to vector<8x128xf32>
    %26 = arith.negf %25 : vector<8x128xf32>
    %27 = math.exp %26 : vector<8x128xf32>
    %cst_17 = arith.constant 1.000000e+00 : f32
    %28 = vector.broadcast %cst_17 : f32 to vector<8x128xf32>
    %29 = arith.addf %28, %27 : vector<8x128xf32>
    %30 = arith.divf %28, %29 : vector<8x128xf32>
    %31 = vector.extract_strided_slice %18 {offsets = [0, 256], sizes = [8, 128], strides = [1, 1]} : vector<8x512xf32> to vector<8x128xf32>
    %32 = math.tanh %31 : vector<8x128xf32>
    %33 = vector.extract_strided_slice %18 {offsets = [0, 384], sizes = [8, 128], strides = [1, 1]} : vector<8x512xf32> to vector<8x128xf32>
    %34 = arith.negf %33 : vector<8x128xf32>
    %35 = math.exp %34 : vector<8x128xf32>
    %cst_18 = arith.constant 1.000000e+00 : f32
    %36 = vector.broadcast %cst_18 : f32 to vector<8x128xf32>
    %37 = arith.addf %36, %35 : vector<8x128xf32>
    %38 = arith.divf %36, %37 : vector<8x128xf32>
    %39 = arith.mulf %30, %12 : vector<8x128xf32>
    %40 = arith.mulf %24, %32 : vector<8x128xf32>
    %41 = arith.addf %39, %40 : vector<8x128xf32>
    %42 = math.tanh %41 : vector<8x128xf32>
    %43 = arith.mulf %38, %42 : vector<8x128xf32>
    %c1_i32 = arith.constant 1 : i32
    %44 = arith.index_cast %c1_i32 : i32 to index
    %c0_19 = arith.constant 0 : index
    %c0_20 = arith.constant 0 : index
    %45 = vector.load %arg7[%44, %c0_19, %c0_20] : memref<8x8x512xf32, #tpu.memory_space<vmem>>, vector<1x8x512xf32>
    %46 = vector.shape_cast %45 : vector<1x8x512xf32> to vector<8x512xf32>
    %47 = arith.truncf %43 : vector<8x128xf32> to vector<8x128xbf16>
    %cst_21 = arith.constant dense<0.000000e+00> : vector<8x512xf32>
    %48 = tpu.matmul %47, %10, %cst_21 {dimension_numbers = #tpu.dot_dimension_numbers<[1], [0], [0], [1], [0, 0, 1, 1], [], []>} : vector<8x128xbf16>, vector<128x512xbf16>, vector<8x512xf32> -> vector<8x512xf32>
    %49 = arith.addf %46, %48 : vector<8x512xf32>
    %50 = vector.extract_strided_slice %49 {offsets = [0, 0], sizes = [8, 128], strides = [1, 1]} : vector<8x512xf32> to vector<8x128xf32>
    %51 = arith.negf %50 : vector<8x128xf32>
    %52 = math.exp %51 : vector<8x128xf32>
    %cst_22 = arith.constant 1.000000e+00 : f32
    %53 = vector.broadcast %cst_22 : f32 to vector<8x128xf32>
    %54 = arith.addf %53, %52 : vector<8x128xf32>
    %55 = arith.divf %53, %54 : vector<8x128xf32>
    %56 = vector.extract_strided_slice %49 {offsets = [0, 128], sizes = [8, 128], strides = [1, 1]} : vector<8x512xf32> to vector<8x128xf32>
    %57 = arith.negf %56 : vector<8x128xf32>
    %58 = math.exp %57 : vector<8x128xf32>
    %cst_23 = arith.constant 1.000000e+00 : f32
    %59 = vector.broadcast %cst_23 : f32 to vector<8x128xf32>
    %60 = arith.addf %59, %58 : vector<8x128xf32>
    %61 = arith.divf %59, %60 : vector<8x128xf32>
    %62 = vector.extract_strided_slice %49 {offsets = [0, 256], sizes = [8, 128], strides = [1, 1]} : vector<8x512xf32> to vector<8x128xf32>
    %63 = math.tanh %62 : vector<8x128xf32>
    %64 = vector.extract_strided_slice %49 {offsets = [0, 384], sizes = [8, 128], strides = [1, 1]} : vector<8x512xf32> to vector<8x128xf32>
    %65 = arith.negf %64 : vector<8x128xf32>
    %66 = math.exp %65 : vector<8x128xf32>
    %cst_24 = arith.constant 1.000000e+00 : f32
    %67 = vector.broadcast %cst_24 : f32 to vector<8x128xf32>
    %68 = arith.addf %67, %66 : vector<8x128xf32>
    %69 = arith.divf %67, %68 : vector<8x128xf32>
    %70 = arith.mulf %61, %41 : vector<8x128xf32>
    %71 = arith.mulf %55, %63 : vector<8x128xf32>
    %72 = arith.addf %70, %71 : vector<8x128xf32>
    %73 = math.tanh %72 : vector<8x128xf32>
    %74 = arith.mulf %69, %73 : vector<8x128xf32>
    %c2_i32 = arith.constant 2 : i32
    %75 = arith.index_cast %c2_i32 : i32 to index
    %c0_25 = arith.constant 0 : index
    %c0_26 = arith.constant 0 : index
    %76 = vector.load %arg7[%75, %c0_25, %c0_26] : memref<8x8x512xf32, #tpu.memory_space<vmem>>, vector<1x8x512xf32>
    %77 = vector.shape_cast %76 : vector<1x8x512xf32> to vector<8x512xf32>
    %78 = arith.truncf %74 : vector<8x128xf32> to vector<8x128xbf16>
    %cst_27 = arith.constant dense<0.000000e+00> : vector<8x512xf32>
    %79 = tpu.matmul %78, %10, %cst_27 {dimension_numbers = #tpu.dot_dimension_numbers<[1], [0], [0], [1], [0, 0, 1, 1], [], []>} : vector<8x128xbf16>, vector<128x512xbf16>, vector<8x512xf32> -> vector<8x512xf32>
    %80 = arith.addf %77, %79 : vector<8x512xf32>
    %81 = vector.extract_strided_slice %80 {offsets = [0, 0], sizes = [8, 128], strides = [1, 1]} : vector<8x512xf32> to vector<8x128xf32>
    %82 = arith.negf %81 : vector<8x128xf32>
    %83 = math.exp %82 : vector<8x128xf32>
    %cst_28 = arith.constant 1.000000e+00 : f32
    %84 = vector.broadcast %cst_28 : f32 to vector<8x128xf32>
    %85 = arith.addf %84, %83 : vector<8x128xf32>
    %86 = arith.divf %84, %85 : vector<8x128xf32>
    %87 = vector.extract_strided_slice %80 {offsets = [0, 128], sizes = [8, 128], strides = [1, 1]} : vector<8x512xf32> to vector<8x128xf32>
    %88 = arith.negf %87 : vector<8x128xf32>
    %89 = math.exp %88 : vector<8x128xf32>
    %cst_29 = arith.constant 1.000000e+00 : f32
    %90 = vector.broadcast %cst_29 : f32 to vector<8x128xf32>
    %91 = arith.addf %90, %89 : vector<8x128xf32>
    %92 = arith.divf %90, %91 : vector<8x128xf32>
    %93 = vector.extract_strided_slice %80 {offsets = [0, 256], sizes = [8, 128], strides = [1, 1]} : vector<8x512xf32> to vector<8x128xf32>
    %94 = math.tanh %93 : vector<8x128xf32>
    %95 = vector.extract_strided_slice %80 {offsets = [0, 384], sizes = [8, 128], strides = [1, 1]} : vector<8x512xf32> to vector<8x128xf32>
    %96 = arith.negf %95 : vector<8x128xf32>
    %97 = math.exp %96 : vector<8x128xf32>
    %cst_30 = arith.constant 1.000000e+00 : f32
    %98 = vector.broadcast %cst_30 : f32 to vector<8x128xf32>
    %99 = arith.addf %98, %97 : vector<8x128xf32>
    %100 = arith.divf %98, %99 : vector<8x128xf32>
    %101 = arith.mulf %92, %72 : vector<8x128xf32>
    %102 = arith.mulf %86, %94 : vector<8x128xf32>
    %103 = arith.addf %101, %102 : vector<8x128xf32>
    %104 = math.tanh %103 : vector<8x128xf32>
    %105 = arith.mulf %100, %104 : vector<8x128xf32>
    %c3_i32 = arith.constant 3 : i32
    %106 = arith.index_cast %c3_i32 : i32 to index
    %c0_31 = arith.constant 0 : index
    %c0_32 = arith.constant 0 : index
    %107 = vector.load %arg7[%106, %c0_31, %c0_32] : memref<8x8x512xf32, #tpu.memory_space<vmem>>, vector<1x8x512xf32>
    %108 = vector.shape_cast %107 : vector<1x8x512xf32> to vector<8x512xf32>
    %109 = arith.truncf %105 : vector<8x128xf32> to vector<8x128xbf16>
    %cst_33 = arith.constant dense<0.000000e+00> : vector<8x512xf32>
    %110 = tpu.matmul %109, %10, %cst_33 {dimension_numbers = #tpu.dot_dimension_numbers<[1], [0], [0], [1], [0, 0, 1, 1], [], []>} : vector<8x128xbf16>, vector<128x512xbf16>, vector<8x512xf32> -> vector<8x512xf32>
    %111 = arith.addf %108, %110 : vector<8x512xf32>
    %112 = vector.extract_strided_slice %111 {offsets = [0, 0], sizes = [8, 128], strides = [1, 1]} : vector<8x512xf32> to vector<8x128xf32>
    %113 = arith.negf %112 : vector<8x128xf32>
    %114 = math.exp %113 : vector<8x128xf32>
    %cst_34 = arith.constant 1.000000e+00 : f32
    %115 = vector.broadcast %cst_34 : f32 to vector<8x128xf32>
    %116 = arith.addf %115, %114 : vector<8x128xf32>
    %117 = arith.divf %115, %116 : vector<8x128xf32>
    %118 = vector.extract_strided_slice %111 {offsets = [0, 128], sizes = [8, 128], strides = [1, 1]} : vector<8x512xf32> to vector<8x128xf32>
    %119 = arith.negf %118 : vector<8x128xf32>
    %120 = math.exp %119 : vector<8x128xf32>
    %cst_35 = arith.constant 1.000000e+00 : f32
    %121 = vector.broadcast %cst_35 : f32 to vector<8x128xf32>
    %122 = arith.addf %121, %120 : vector<8x128xf32>
    %123 = arith.divf %121, %122 : vector<8x128xf32>
    %124 = vector.extract_strided_slice %111 {offsets = [0, 256], sizes = [8, 128], strides = [1, 1]} : vector<8x512xf32> to vector<8x128xf32>
    %125 = math.tanh %124 : vector<8x128xf32>
    %126 = vector.extract_strided_slice %111 {offsets = [0, 384], sizes = [8, 128], strides = [1, 1]} : vector<8x512xf32> to vector<8x128xf32>
    %127 = arith.negf %126 : vector<8x128xf32>
    %128 = math.exp %127 : vector<8x128xf32>
    %cst_36 = arith.constant 1.000000e+00 : f32
    %129 = vector.broadcast %cst_36 : f32 to vector<8x128xf32>
    %130 = arith.addf %129, %128 : vector<8x128xf32>
    %131 = arith.divf %129, %130 : vector<8x128xf32>
    %132 = arith.mulf %123, %103 : vector<8x128xf32>
    %133 = arith.mulf %117, %125 : vector<8x128xf32>
    %134 = arith.addf %132, %133 : vector<8x128xf32>
    %135 = math.tanh %134 : vector<8x128xf32>
    %136 = arith.mulf %131, %135 : vector<8x128xf32>
    %c4_i32 = arith.constant 4 : i32
    %137 = arith.index_cast %c4_i32 : i32 to index
    %c0_37 = arith.constant 0 : index
    %c0_38 = arith.constant 0 : index
    %138 = vector.load %arg7[%137, %c0_37, %c0_38] : memref<8x8x512xf32, #tpu.memory_space<vmem>>, vector<1x8x512xf32>
    %139 = vector.shape_cast %138 : vector<1x8x512xf32> to vector<8x512xf32>
    %140 = arith.truncf %136 : vector<8x128xf32> to vector<8x128xbf16>
    %cst_39 = arith.constant dense<0.000000e+00> : vector<8x512xf32>
    %141 = tpu.matmul %140, %10, %cst_39 {dimension_numbers = #tpu.dot_dimension_numbers<[1], [0], [0], [1], [0, 0, 1, 1], [], []>} : vector<8x128xbf16>, vector<128x512xbf16>, vector<8x512xf32> -> vector<8x512xf32>
    %142 = arith.addf %139, %141 : vector<8x512xf32>
    %143 = vector.extract_strided_slice %142 {offsets = [0, 0], sizes = [8, 128], strides = [1, 1]} : vector<8x512xf32> to vector<8x128xf32>
    %144 = arith.negf %143 : vector<8x128xf32>
    %145 = math.exp %144 : vector<8x128xf32>
    %cst_40 = arith.constant 1.000000e+00 : f32
    %146 = vector.broadcast %cst_40 : f32 to vector<8x128xf32>
    %147 = arith.addf %146, %145 : vector<8x128xf32>
    %148 = arith.divf %146, %147 : vector<8x128xf32>
    %149 = vector.extract_strided_slice %142 {offsets = [0, 128], sizes = [8, 128], strides = [1, 1]} : vector<8x512xf32> to vector<8x128xf32>
    %150 = arith.negf %149 : vector<8x128xf32>
    %151 = math.exp %150 : vector<8x128xf32>
    %cst_41 = arith.constant 1.000000e+00 : f32
    %152 = vector.broadcast %cst_41 : f32 to vector<8x128xf32>
    %153 = arith.addf %152, %151 : vector<8x128xf32>
    %154 = arith.divf %152, %153 : vector<8x128xf32>
    %155 = vector.extract_strided_slice %142 {offsets = [0, 256], sizes = [8, 128], strides = [1, 1]} : vector<8x512xf32> to vector<8x128xf32>
    %156 = math.tanh %155 : vector<8x128xf32>
    %157 = vector.extract_strided_slice %142 {offsets = [0, 384], sizes = [8, 128], strides = [1, 1]} : vector<8x512xf32> to vector<8x128xf32>
    %158 = arith.negf %157 : vector<8x128xf32>
    %159 = math.exp %158 : vector<8x128xf32>
    %cst_42 = arith.constant 1.000000e+00 : f32
    %160 = vector.broadcast %cst_42 : f32 to vector<8x128xf32>
    %161 = arith.addf %160, %159 : vector<8x128xf32>
    %162 = arith.divf %160, %161 : vector<8x128xf32>
    %163 = arith.mulf %154, %134 : vector<8x128xf32>
    %164 = arith.mulf %148, %156 : vector<8x128xf32>
    %165 = arith.addf %163, %164 : vector<8x128xf32>
    %166 = math.tanh %165 : vector<8x128xf32>
    %167 = arith.mulf %162, %166 : vector<8x128xf32>
    %c5_i32 = arith.constant 5 : i32
    %168 = arith.index_cast %c5_i32 : i32 to index
    %c0_43 = arith.constant 0 : index
    %c0_44 = arith.constant 0 : index
    %169 = vector.load %arg7[%168, %c0_43, %c0_44] : memref<8x8x512xf32, #tpu.memory_space<vmem>>, vector<1x8x512xf32>
    %170 = vector.shape_cast %169 : vector<1x8x512xf32> to vector<8x512xf32>
    %171 = arith.truncf %167 : vector<8x128xf32> to vector<8x128xbf16>
    %cst_45 = arith.constant dense<0.000000e+00> : vector<8x512xf32>
    %172 = tpu.matmul %171, %10, %cst_45 {dimension_numbers = #tpu.dot_dimension_numbers<[1], [0], [0], [1], [0, 0, 1, 1], [], []>} : vector<8x128xbf16>, vector<128x512xbf16>, vector<8x512xf32> -> vector<8x512xf32>
    %173 = arith.addf %170, %172 : vector<8x512xf32>
    %174 = vector.extract_strided_slice %173 {offsets = [0, 0], sizes = [8, 128], strides = [1, 1]} : vector<8x512xf32> to vector<8x128xf32>
    %175 = arith.negf %174 : vector<8x128xf32>
    %176 = math.exp %175 : vector<8x128xf32>
    %cst_46 = arith.constant 1.000000e+00 : f32
    %177 = vector.broadcast %cst_46 : f32 to vector<8x128xf32>
    %178 = arith.addf %177, %176 : vector<8x128xf32>
    %179 = arith.divf %177, %178 : vector<8x128xf32>
    %180 = vector.extract_strided_slice %173 {offsets = [0, 128], sizes = [8, 128], strides = [1, 1]} : vector<8x512xf32> to vector<8x128xf32>
    %181 = arith.negf %180 : vector<8x128xf32>
    %182 = math.exp %181 : vector<8x128xf32>
    %cst_47 = arith.constant 1.000000e+00 : f32
    %183 = vector.broadcast %cst_47 : f32 to vector<8x128xf32>
    %184 = arith.addf %183, %182 : vector<8x128xf32>
    %185 = arith.divf %183, %184 : vector<8x128xf32>
    %186 = vector.extract_strided_slice %173 {offsets = [0, 256], sizes = [8, 128], strides = [1, 1]} : vector<8x512xf32> to vector<8x128xf32>
    %187 = math.tanh %186 : vector<8x128xf32>
    %188 = vector.extract_strided_slice %173 {offsets = [0, 384], sizes = [8, 128], strides = [1, 1]} : vector<8x512xf32> to vector<8x128xf32>
    %189 = arith.negf %188 : vector<8x128xf32>
    %190 = math.exp %189 : vector<8x128xf32>
    %cst_48 = arith.constant 1.000000e+00 : f32
    %191 = vector.broadcast %cst_48 : f32 to vector<8x128xf32>
    %192 = arith.addf %191, %190 : vector<8x128xf32>
    %193 = arith.divf %191, %192 : vector<8x128xf32>
    %194 = arith.mulf %185, %165 : vector<8x128xf32>
    %195 = arith.mulf %179, %187 : vector<8x128xf32>
    %196 = arith.addf %194, %195 : vector<8x128xf32>
    %197 = math.tanh %196 : vector<8x128xf32>
    %198 = arith.mulf %193, %197 : vector<8x128xf32>
    %c6_i32 = arith.constant 6 : i32
    %199 = arith.index_cast %c6_i32 : i32 to index
    %c0_49 = arith.constant 0 : index
    %c0_50 = arith.constant 0 : index
    %200 = vector.load %arg7[%199, %c0_49, %c0_50] : memref<8x8x512xf32, #tpu.memory_space<vmem>>, vector<1x8x512xf32>
    %201 = vector.shape_cast %200 : vector<1x8x512xf32> to vector<8x512xf32>
    %202 = arith.truncf %198 : vector<8x128xf32> to vector<8x128xbf16>
    %cst_51 = arith.constant dense<0.000000e+00> : vector<8x512xf32>
    %203 = tpu.matmul %202, %10, %cst_51 {dimension_numbers = #tpu.dot_dimension_numbers<[1], [0], [0], [1], [0, 0, 1, 1], [], []>} : vector<8x128xbf16>, vector<128x512xbf16>, vector<8x512xf32> -> vector<8x512xf32>
    %204 = arith.addf %201, %203 : vector<8x512xf32>
    %205 = vector.extract_strided_slice %204 {offsets = [0, 0], sizes = [8, 128], strides = [1, 1]} : vector<8x512xf32> to vector<8x128xf32>
    %206 = arith.negf %205 : vector<8x128xf32>
    %207 = math.exp %206 : vector<8x128xf32>
    %cst_52 = arith.constant 1.000000e+00 : f32
    %208 = vector.broadcast %cst_52 : f32 to vector<8x128xf32>
    %209 = arith.addf %208, %207 : vector<8x128xf32>
    %210 = arith.divf %208, %209 : vector<8x128xf32>
    %211 = vector.extract_strided_slice %204 {offsets = [0, 128], sizes = [8, 128], strides = [1, 1]} : vector<8x512xf32> to vector<8x128xf32>
    %212 = arith.negf %211 : vector<8x128xf32>
    %213 = math.exp %212 : vector<8x128xf32>
    %cst_53 = arith.constant 1.000000e+00 : f32
    %214 = vector.broadcast %cst_53 : f32 to vector<8x128xf32>
    %215 = arith.addf %214, %213 : vector<8x128xf32>
    %216 = arith.divf %214, %215 : vector<8x128xf32>
    %217 = vector.extract_strided_slice %204 {offsets = [0, 256], sizes = [8, 128], strides = [1, 1]} : vector<8x512xf32> to vector<8x128xf32>
    %218 = math.tanh %217 : vector<8x128xf32>
    %219 = vector.extract_strided_slice %204 {offsets = [0, 384], sizes = [8, 128], strides = [1, 1]} : vector<8x512xf32> to vector<8x128xf32>
    %220 = arith.negf %219 : vector<8x128xf32>
    %221 = math.exp %220 : vector<8x128xf32>
    %cst_54 = arith.constant 1.000000e+00 : f32
    %222 = vector.broadcast %cst_54 : f32 to vector<8x128xf32>
    %223 = arith.addf %222, %221 : vector<8x128xf32>
    %224 = arith.divf %222, %223 : vector<8x128xf32>
    %225 = arith.mulf %216, %196 : vector<8x128xf32>
    %226 = arith.mulf %210, %218 : vector<8x128xf32>
    %227 = arith.addf %225, %226 : vector<8x128xf32>
    %228 = math.tanh %227 : vector<8x128xf32>
    %229 = arith.mulf %224, %228 : vector<8x128xf32>
    %c7_i32 = arith.constant 7 : i32
    %230 = arith.index_cast %c7_i32 : i32 to index
    %c0_55 = arith.constant 0 : index
    %c0_56 = arith.constant 0 : index
    %231 = vector.load %arg7[%230, %c0_55, %c0_56] : memref<8x8x512xf32, #tpu.memory_space<vmem>>, vector<1x8x512xf32>
    %232 = vector.shape_cast %231 : vector<1x8x512xf32> to vector<8x512xf32>
    %233 = arith.truncf %229 : vector<8x128xf32> to vector<8x128xbf16>
    %cst_57 = arith.constant dense<0.000000e+00> : vector<8x512xf32>
    %234 = tpu.matmul %233, %10, %cst_57 {dimension_numbers = #tpu.dot_dimension_numbers<[1], [0], [0], [1], [0, 0, 1, 1], [], []>} : vector<8x128xbf16>, vector<128x512xbf16>, vector<8x512xf32> -> vector<8x512xf32>
    %235 = arith.addf %232, %234 : vector<8x512xf32>
    %236 = vector.extract_strided_slice %235 {offsets = [0, 0], sizes = [8, 128], strides = [1, 1]} : vector<8x512xf32> to vector<8x128xf32>
    %237 = arith.negf %236 : vector<8x128xf32>
    %238 = math.exp %237 : vector<8x128xf32>
    %cst_58 = arith.constant 1.000000e+00 : f32
    %239 = vector.broadcast %cst_58 : f32 to vector<8x128xf32>
    %240 = arith.addf %239, %238 : vector<8x128xf32>
    %241 = arith.divf %239, %240 : vector<8x128xf32>
    %242 = vector.extract_strided_slice %235 {offsets = [0, 128], sizes = [8, 128], strides = [1, 1]} : vector<8x512xf32> to vector<8x128xf32>
    %243 = arith.negf %242 : vector<8x128xf32>
    %244 = math.exp %243 : vector<8x128xf32>
    %cst_59 = arith.constant 1.000000e+00 : f32
    %245 = vector.broadcast %cst_59 : f32 to vector<8x128xf32>
    %246 = arith.addf %245, %244 : vector<8x128xf32>
    %247 = arith.divf %245, %246 : vector<8x128xf32>
    %248 = vector.extract_strided_slice %235 {offsets = [0, 256], sizes = [8, 128], strides = [1, 1]} : vector<8x512xf32> to vector<8x128xf32>
    %249 = math.tanh %248 : vector<8x128xf32>
    %250 = vector.extract_strided_slice %235 {offsets = [0, 384], sizes = [8, 128], strides = [1, 1]} : vector<8x512xf32> to vector<8x128xf32>
    %251 = arith.negf %250 : vector<8x128xf32>
    %252 = math.exp %251 : vector<8x128xf32>
    %cst_60 = arith.constant 1.000000e+00 : f32
    %253 = vector.broadcast %cst_60 : f32 to vector<8x128xf32>
    %254 = arith.addf %253, %252 : vector<8x128xf32>
    %255 = arith.divf %253, %254 : vector<8x128xf32>
    %256 = arith.mulf %247, %227 : vector<8x128xf32>
    %257 = arith.mulf %241, %249 : vector<8x128xf32>
    %258 = arith.addf %256, %257 : vector<8x128xf32>
    %259 = math.tanh %258 : vector<8x128xf32>
    %260 = arith.mulf %255, %259 : vector<8x128xf32>
    %c8_i32 = arith.constant 8 : i32
    %261 = arith.truncf %260 : vector<8x128xf32> to vector<8x128xbf16>
    %c0_61 = arith.constant 0 : index
    %c0_62 = arith.constant 0 : index
    %262 = vector.load %arg5[%c0_61, %c0_62] : memref<128x128xbf16, #tpu.memory_space<vmem>>, vector<128x128xbf16>
    %cst_63 = arith.constant dense<0.000000e+00> : vector<8x128xf32>
    %263 = tpu.matmul %261, %262, %cst_63 {dimension_numbers = #tpu.dot_dimension_numbers<[1], [0], [0], [1], [0, 0, 1, 1], [], []>} : vector<8x128xbf16>, vector<128x128xbf16>, vector<8x128xf32> -> vector<8x128xf32>
    %264 = tpu.iota {dimensions = array<i32: 1>} : vector<8x128xi32>
    %c4_i32_64 = arith.constant 4 : i32
    %265 = vector.broadcast %c4_i32_64 : i32 to vector<8x128xi32>
    %266 = arith.cmpi slt, %264, %265 : vector<8x128xi32>
    %cst_65 = arith.constant -1.000000e+30 : f32
    %267 = vector.broadcast %cst_65 : f32 to vector<8x128xf32>
    %268 = arith.select %266, %263, %267 : vector<8x128xi1>, vector<8x128xf32>
    %cst_66 = arith.constant dense<0xFF800000> : vector<8xf32>
    %269 = vector.multi_reduction <maximumf>, %268, %cst_66 [1] : vector<8x128xf32> to vector<8xf32>
    %270 = vector.shape_cast %269 : vector<8xf32> to vector<8x1xf32>
    %271 = vector.broadcast %270 : vector<8x1xf32> to vector<8x128xf32>
    %272 = arith.subf %268, %271 : vector<8x128xf32>
    %273 = math.exp %272 : vector<8x128xf32>
    %cst_67 = arith.constant dense<0.000000e+00> : vector<8xf32>
    %274 = vector.multi_reduction <add>, %273, %cst_67 [1] : vector<8x128xf32> to vector<8xf32>
    %275 = vector.shape_cast %274 : vector<8xf32> to vector<8x1xf32>
    %276 = tpu.reciprocal %275 {approx = true} : vector<8x1xf32> -> vector<8x1xf32>
    %277 = vector.broadcast %276 : vector<8x1xf32> to vector<8x128xf32>
    %278 = arith.mulf %273, %277 : vector<8x128xf32>
    %c0_68 = arith.constant 0 : index
    %c0_69 = arith.constant 0 : index
    %279 = vector.load %arg6[%c0_68, %c0_69] : memref<8x128xf32, #tpu.memory_space<vmem>>, vector<8x128xf32>
    tpu.vector_store %arg6[%c0_68, %c0_69], %278 {strides = array<i32>} : memref<8x128xf32, #tpu.memory_space<vmem>>, vector<8x128xf32>,
    return
  }
  func.func @transform_0(%arg0: i32) -> (i32, i32, i32) {
    %c0_i32 = arith.constant 0 : i32
    %c0_i32_0 = arith.constant 0 : i32
    %c0_i32_1 = arith.constant 0 : i32
    return %c0_i32, %arg0, %c0_i32_0 : i32, i32, i32
  }
  func.func @transform_1(%arg0: i32) -> (i32, i32) {
    %c0_i32 = arith.constant 0 : i32
    %c0_i32_0 = arith.constant 0 : i32
    %c0_i32_1 = arith.constant 0 : i32
    return %c0_i32, %c0_i32_0 : i32, i32
  }
  func.func @transform_2(%arg0: i32) -> (i32, i32) {
    %c0_i32 = arith.constant 0 : i32
    %c0_i32_0 = arith.constant 0 : i32
    %c0_i32_1 = arith.constant 0 : i32
    return %c0_i32, %c0_i32_0 : i32, i32
  }
  func.func @transform_3(%arg0: i32) -> (i32, i32) {
    %c0_i32 = arith.constant 0 : i32
    %c0_i32_0 = arith.constant 0 : i32
    %c0_i32_1 = arith.constant 0 : i32
    return %c0_i32, %c0_i32_0 : i32, i32
  }
  func.func @transform_4(%arg0: i32) -> (i32, i32) {
    %c0_i32 = arith.constant 0 : i32
    %c0_i32_0 = arith.constant 0 : i32
    %c0_i32_1 = arith.constant 0 : i32
    return %c0_i32, %c0_i32_0 : i32, i32
  }
  func.func @transform_5(%arg0: i32) -> (i32, i32) {
    %c0_i32 = arith.constant 0 : i32
    %c0_i32_0 = arith.constant 0 : i32
    return %arg0, %c0_i32 : i32, i32
  }
}

</mosaic_0001>

<bundles_post_ra>
// kernel: tpu_custom_call.1
= control target key start
LH: loop header
LB: loop body
LE: loop exit
PB: predicated region body
PF: predicated region fallthrough
CT: control target
= control target key end

     0   :  { %10 = vsyncpa [#allocation4], 0  ;;  %s2900_s0 = inlined_call_operand.hbm [shape: bf16[8,8,128], index: 0, kind: input, shape index: {}]   ;;  %s2901_s1 = inlined_call_operand.hbm [shape: bf16[128,512], index: 1, kind: input, shape index: {}]   ;;  %s2902_s2 = inlined_call_operand.hbm [shape: bf16[128,512], index: 2, kind: input, shape index: {}]   ;;  %s2903_s3 = inlined_call_operand.vmem [shape: f32[1,512], index: 3, kind: input, shape index: {}]   ;;  %s2904_s4 = inlined_call_operand.hbm [shape: bf16[128,128], index: 4, kind: input, shape index: {}]   ;;  %s2905_s5 = inlined_call_operand.hbm [shape: f32[8,128], index: 5, kind: output, shape index: {}]  }
   0x1   :  { %11 = vsyncpa [#allocation7], 0 }
   0x2   :  { %12 = vsyncpa [#allocation10], 0 }
   0x3   :  { %13 = vsyncpa [#allocation5], 0  ;;  %s2308_s18 = smov [#allocation6]  }
   0x4   :  { %s31_s19 = sshll.u32 %s2308_s18, 4  ;;  %s32_s19 = int_to_ptr.vmem [resolvable:$true] %s31_s19 }
   0x5   :  { %s2208_s20 = scalar_lea.vmem %s32_s19, 4096  ;;  %p2213_p1 = scmp.lt.s32.totalorder %s32_s19, %s32_s19 }
   0x6   :  { %p2209_p0 = scmp.ne.s32.totalorder %s32_s19, %s2208_s20  ;;  %p2214_p2 = scmp.lt.s32.totalorder %s2208_s20, %s2208_s20 }
   0x8   :  { %p2215_p3 = por %p2214_p2, %p2213_p1 }
   0xa   :  { %p2216_p4 = pnand %p2215_p3, %p2209_p0 }
   0xc   :  { %2219 = shalt.err (!%p2216_p4)
}
   0xd   :  { %s2309_s21 = smov 256   ;;  %s2310_s22 = smov 16  }
   0xe   :  { %37 = dma.hbm_to_vmem [thread:$0]  %s2901_s1, 4096, %s32_s19, [#allocation7], %s2309_s21, %s2309_s21, %s2310_s22  }
   0xf   :  { %s2311_s25 = smov [#allocation3]  }
  0x10   :  { %s19_s26 = sshll.u32 %s2311_s25, 4  ;;  %s20_s26 = int_to_ptr.vmem [resolvable:$true] %s19_s26 }
  0x11   :  { %s2228_s27 = scalar_lea.vmem %s20_s26, 512  ;;  %p2233_p6 = scmp.lt.s32.totalorder %s20_s26, %s20_s26 }
  0x12   :  { %p2229_p5 = scmp.ne.s32.totalorder %s20_s26, %s2228_s27  ;;  %p2234_p7 = scmp.lt.s32.totalorder %s2228_s27, %s2228_s27 }
  0x14   :  { %p2235_p8 = por %p2234_p7, %p2233_p6 }
  0x16   :  { %p2236_p9 = pnand %p2235_p8, %p2229_p5 }
  0x18   :  { %2239 = shalt.err (!%p2236_p9)
}
  0x19   :  { %s2312_s28 = smov 64   ;;  %s2313_s29 = smov 4  }
  0x1a   :  { %25 = dma.hbm_to_vmem [thread:$0]  %s2900_s0, 512, %s20_s26, [#allocation4], %s2312_s28, %s2312_s28, %s2313_s29  }
  0x1b   :  { %s2314_s7 = smov [#allocation8]   ;;  %s2315_s9 = smov [#allocation9]  }
  0x1c   :  { %s43_s8 = sshll.u32 %s2314_s7, 4  ;;  %s57_s1 = sshll.u32 %s2315_s9, 4  ;;  %s44_s8 = int_to_ptr.vmem [resolvable:$true] %s43_s8  ;;  %s58_s1 = int_to_ptr.vmem [resolvable:$true] %s57_s1 }
  0x1d   :  { %s2248_s10 = scalar_lea.vmem %s44_s8, 4096  ;;  %p2253_p11 = scmp.lt.s32.totalorder %s44_s8, %s44_s8 }
  0x1e   :  { %p2249_p10 = scmp.ne.s32.totalorder %s44_s8, %s2248_s10  ;;  %p2254_p12 = scmp.lt.s32.totalorder %s2248_s10, %s2248_s10 }
  0x20   :  { %p2255_p13 = por %p2254_p12, %p2253_p11 }
  0x22   :  { %p2256_p0 = pnand %p2255_p13, %p2249_p10 }
  0x24   :  { %2259 = shalt.err (!%p2256_p0)
}
  0x25   :  { %49 = dma.hbm_to_vmem [thread:$0]  %s2902_s2, 4096, %s44_s8, [#allocation7], %s2309_s21, %s2309_s21, %s2310_s22  }
  0x26   :  { %s2268_s0 = scalar_lea.vmem %s58_s1, 1024  ;;  %p2273_p2 = scmp.lt.s32.totalorder %s58_s1, %s58_s1 }
  0x27   :  { %p2269_p1 = scmp.ne.s32.totalorder %s58_s1, %s2268_s0  ;;  %p2274_p3 = scmp.lt.s32.totalorder %s2268_s0, %s2268_s0 }
  0x29   :  { %p2275_p4 = por %p2274_p3, %p2273_p2 }
  0x2b   :  { %p2276_p5 = pnand %p2275_p4, %p2269_p1 }
  0x2d   :  { %2279 = shalt.err (!%p2276_p5)
}
  0x2e   :  { %63 = dma.hbm_to_vmem [thread:$0]  %s2904_s4, 1024, %s58_s1, [#allocation10], %s2312_s28, %s2312_s28, %s2313_s29  }
  0x2f   :  { %2300 = dma.done.wait [#allocation4], 512  }
  0x30   :  { %2301 = vsyncadd [#allocation4], 4294966784 }
  0x31   :  { %2302 = dma.done.wait [#allocation7], 8192  }
  0x32   :  { %2303 = vsyncadd [#allocation7], 4294959104 }
  0x33   :  { %2304 = dma.done.wait [#allocation10], 1024  }
  0x34   :  { %2305 = vsyncadd [#allocation10], 4294966272  ;;  %v2907_v0 = vmov 0   ;;  %v1928_v1 = vld [vmem:[#allocation6 + $0xe4] ss:$16 sps:$4 sm:$0xff]   ;;  %v1989_v44 = vld [vmem:[#allocation3 + $0x8] sm:$0xff]  }
  0x35   :  { %333 = vmatprep.mubr.bf16.mxu0 %v2907_v0  ;;  %406 = vmatprep.mubr.bf16.mxu1 %v2907_v0  ;;  %v1930_v2 = vld [vmem:[#allocation6 + $0xec] ss:$16 sps:$4 sm:$0xff]   ;;  %v1932_v3 = vld [vmem:[#allocation6 + $0xe0] ss:$16 sps:$4 sm:$0xff]   ;;  %v1933_v4 = vld [vmem:[#allocation6 + $0xe8] ss:$16 sps:$4 sm:$0xff]  }
  0x36   :  { %301 = vmatprep.subr.bf16.mxu0 %v1928_v1  ;;  %374 = vmatprep.subr.bf16.mxu1 %v1930_v2  ;;  %v1934_v5 = vld [vmem:[#allocation6 + $0xc4] ss:$16 sps:$4 sm:$0xff]   ;;  %v1936_v6 = vld [vmem:[#allocation6 + $0xcc] ss:$16 sps:$4 sm:$0xff]   ;;  %v1938_v7 = vld [vmem:[#allocation6 + $0xc0] ss:$16 sps:$4 sm:$0xff]  }
  0x37   :  { %302 = vmatpush1.bf16.msra.mxu0 %v1932_v3  ;;  %375 = vmatpush1.bf16.msra.mxu1 %v1933_v4  ;;  %v1939_v8 = vld [vmem:[#allocation6 + $0xc8] ss:$16 sps:$4 sm:$0xff]   ;;  %v1940_v9 = vld [vmem:[#allocation6 + $0xa4] ss:$16 sps:$4 sm:$0xff]   ;;  %v1942_v10 = vld [vmem:[#allocation6 + $0xac] ss:$16 sps:$4 sm:$0xff]  }
  0x38   :  { %303 = vmatprep.subr.bf16.mxu0 %v1934_v5  ;;  %376 = vmatprep.subr.bf16.mxu1 %v1936_v6  ;;  %v1944_v11 = vld [vmem:[#allocation6 + $0xa0] ss:$16 sps:$4 sm:$0xff]   ;;  %v1945_v12 = vld [vmem:[#allocation6 + $0xa8] ss:$16 sps:$4 sm:$0xff]   ;;  %v1946_v13 = vld [vmem:[#allocation6 + $0x84] ss:$16 sps:$4 sm:$0xff]   ;;  %v2906_v6 = vlaneseq }
  0x39   :  { %v1948_v14 = vld [vmem:[#allocation6 + $0x8c] ss:$16 sps:$4 sm:$0xff]   ;;  %v1950_v15 = vld [vmem:[#allocation6 + $0x80] ss:$16 sps:$4 sm:$0xff]   ;;  %v1951_v16 = vld [vmem:[#allocation6 + $0x88] ss:$16 sps:$4 sm:$0xff]  }
  0x3a   :  { %v1952_v17 = vld [vmem:[#allocation6 + $0x64] ss:$16 sps:$4 sm:$0xff]   ;;  %v1954_v18 = vld [vmem:[#allocation6 + $0x6c] ss:$16 sps:$4 sm:$0xff]   ;;  %v1956_v19 = vld [vmem:[#allocation6 + $0x60] ss:$16 sps:$4 sm:$0xff]  }
  0x3b   :  { %304 = vmatpush1.bf16.msra.mxu0 %v1938_v7  ;;  %377 = vmatpush1.bf16.msra.mxu1 %v1939_v8  ;;  %v1957_v20 = vld [vmem:[#allocation6 + $0x68] ss:$16 sps:$4 sm:$0xff]   ;;  %v1958_v21 = vld [vmem:[#allocation6 + $0x44] ss:$16 sps:$4 sm:$0xff]   ;;  %v1960_v22 = vld [vmem:[#allocation6 + $0x4c] ss:$16 sps:$4 sm:$0xff]  }
  0x3c   :  { %305 = vmatprep.subr.bf16.mxu0 %v1940_v9  ;;  %378 = vmatprep.subr.bf16.mxu1 %v1942_v10  ;;  %v1962_v23 = vld [vmem:[#allocation6 + $0x40] ss:$16 sps:$4 sm:$0xff]   ;;  %v1963_v24 = vld [vmem:[#allocation6 + $0x48] ss:$16 sps:$4 sm:$0xff]   ;;  %v1964_v25 = vld [vmem:[#allocation6 + $0x24] ss:$16 sps:$4 sm:$0xff]  }
  0x3d   :  { %v1966_v26 = vld [vmem:[#allocation6 + $0x2c] ss:$16 sps:$4 sm:$0xff]   ;;  %v1968_v27 = vld [vmem:[#allocation6 + $0x20] ss:$16 sps:$4 sm:$0xff]   ;;  %v1969_v28 = vld [vmem:[#allocation6 + $0x28] ss:$16 sps:$4 sm:$0xff]  }
  0x3e   :  { %v1970_v29 = vld [vmem:[#allocation6 + $0x4] ss:$16 sps:$4 sm:$0xff]   ;;  %v1972_v30 = vld [vmem:[#allocation6 + $0xc] ss:$16 sps:$4 sm:$0xff]   ;;  %v1974_v31 = vld [vmem:[#allocation6] ss:$16 sps:$4 sm:$0xff]  }
  0x3f   :  { %306 = vmatpush1.bf16.msra.mxu0 %v1944_v11  ;;  %379 = vmatpush1.bf16.msra.mxu1 %v1945_v12  ;;  %v1975_v32 = vld [vmem:[#allocation6 + $0x8] ss:$16 sps:$4 sm:$0xff]   ;;  %v2370_v33 = vld [vmem:[#allocation8 + $0xe4] ss:$16 sps:$4 sm:$0xff]   ;;  %v2372_v34 = vld [vmem:[#allocation8 + $0xec] ss:$16 sps:$4 sm:$0xff]  }
  0x40   :  { %307 = vmatprep.subr.bf16.mxu0 %v1946_v13  ;;  %380 = vmatprep.subr.bf16.mxu1 %v1948_v14  ;;  %v1976_v35 = vld [vmem:[#allocation3] sm:$0xff]   ;;  %v2376_v37 = vld [vmem:[#allocation8 + $0xe8] ss:$16 sps:$4 sm:$0xff]   ;;  %v2382_v39 = vld [vmem:[#allocation8 + $0xcc] ss:$16 sps:$4 sm:$0xff]   ;;  %v450_v7 = vshrl.u32 %v2906_v6, 7 }
  0x41   :  { %v2374_v36 = vld [vmem:[#allocation8 + $0xe0] ss:$16 sps:$4 sm:$0xff]   ;;  %v2380_v38 = vld [vmem:[#allocation8 + $0xc4] ss:$16 sps:$4 sm:$0xff]   ;;  %v2388_v41 = vld [vmem:[#allocation8 + $0xc8] ss:$16 sps:$4 sm:$0xff]  }
  0x42   :  { %v2384_v40 = vld [vmem:[#allocation8 + $0xc0] ss:$16 sps:$4 sm:$0xff]   ;;  %v2392_v42 = vld [vmem:[#allocation8 + $0xa4] ss:$16 sps:$4 sm:$0xff]   ;;  %v2394_v43 = vld [vmem:[#allocation8 + $0xac] ss:$16 sps:$4 sm:$0xff]  }
  0x43   :  { %308 = vmatpush1.bf16.msra.mxu0 %v1950_v15  ;;  %381 = vmatpush1.bf16.msra.mxu1 %v1951_v16  ;;  %v2398_v45 = vld [vmem:[#allocation8 + $0xa0] ss:$16 sps:$4 sm:$0xff]   ;;  %v2400_v46 = vld [vmem:[#allocation8 + $0xa8] ss:$16 sps:$4 sm:$0xff]   ;;  %v2404_v47 = vld [vmem:[#allocation8 + $0x84] ss:$16 sps:$4 sm:$0xff]  }
  0x44   :  { %309 = vmatprep.subr.bf16.mxu0 %v1952_v17  ;;  %382 = vmatprep.subr.bf16.mxu1 %v1954_v18  ;;  %v2408_v48 = vld [vmem:[#allocation8 + $0x8c] ss:$16 sps:$4 sm:$0xff]   ;;  %v2410_v49 = vld [vmem:[#allocation8 + $0x80] ss:$16 sps:$4 sm:$0xff]   ;;  %v2412_v50 = vld [vmem:[#allocation8 + $0x88] ss:$16 sps:$4 sm:$0xff]  }
  0x45   :  { %v2416_v51 = vld [vmem:[#allocation8 + $0x64] ss:$16 sps:$4 sm:$0xff]   ;;  %v2420_v53 = vld [vmem:[#allocation8 + $0x6c] ss:$16 sps:$4 sm:$0xff]   ;;  %v2424_v54 = vld [vmem:[#allocation8 + $0x60] ss:$16 sps:$4 sm:$0xff]  }
  0x46   :  { %v2002_v52 = vld [vmem:[#allocation3 + $0x10] sm:$0xff]   ;;  %v2426_v55 = vld [vmem:[#allocation8 + $0x68] ss:$16 sps:$4 sm:$0xff]   ;;  %v2430_v57 = vld [vmem:[#allocation8 + $0x4c] ss:$16 sps:$4 sm:$0xff]   ;;  %v459_v8 = vsub.s32 2, %v450_v7 }
  0x47   :  { %310 = vmatpush1.bf16.msra.mxu0 %v1956_v19  ;;  %383 = vmatpush1.bf16.msra.mxu1 %v1957_v20  ;;  %v2428_v56 = vld [vmem:[#allocation8 + $0x44] ss:$16 sps:$4 sm:$0xff]   ;;  %v2438_v58 = vld [vmem:[#allocation8 + $0x40] ss:$16 sps:$4 sm:$0xff]   ;;  %v2440_v59 = vld [vmem:[#allocation8 + $0x48] ss:$16 sps:$4 sm:$0xff]  }
  0x48   :  { %311 = vmatprep.subr.bf16.mxu0 %v1958_v21  ;;  %384 = vmatprep.subr.bf16.mxu1 %v1960_v22  ;;  %v2444_v60 = vld [vmem:[#allocation8 + $0x24] ss:$16 sps:$4 sm:$0xff]   ;;  %v2446_v61 = vld [vmem:[#allocation8 + $0x2c] ss:$16 sps:$4 sm:$0xff]   ;;  %v2452_v63 = vld [vmem:[#allocation8 + $0x20] ss:$16 sps:$4 sm:$0xff]  }
  0x49   :  { %v2015_v62 = vld [vmem:[#allocation3 + $0x18] sm:$0xff]   ;;  %v2458_v2 = vld [vmem:[#allocation8 + $0x4] ss:$16 sps:$4 sm:$0xff]   ;;  %v2464_v4 = vld [vmem:[#allocation8] ss:$16 sps:$4 sm:$0xff]   ;;  %v451_v9 = vsub.s32 0, %v450_v7 }
  0x4a   :  { %v2454_v1 = vld [vmem:[#allocation8 + $0x28] ss:$16 sps:$4 sm:$0xff]   ;;  %v2460_v3 = vld [vmem:[#allocation8 + $0xc] ss:$16 sps:$4 sm:$0xff]   ;;  %v463_v10 = vsub.s32 3, %v450_v7  ;;  %v455_v15 = vsub.s32 1, %v450_v7 }
  0x4b   :  { %312 = vmatpush1.bf16.msra.mxu0 %v1962_v23  ;;  %385 = vmatpush1.bf16.msra.mxu1 %v1963_v24  ;;  %v2466_v5 = vld [vmem:[#allocation8 + $0x8] ss:$16 sps:$4 sm:$0xff]   ;;  %v447_v12 = vld [vmem:[%s2903_s3] sm:$0xf]  ;;  %vm2318_vm0 = vmmov 0   ;;  %s2319_s3 = smov [#allocation11]  }
  0x4c   :  { %313 = vmatprep.subr.bf16.mxu0 %v1964_v25  ;;  %386 = vmatprep.subr.bf16.mxu1 %v1966_v26  ;;  %v2520_v14 = vrot.slane %v447_v12, %v459_v8  ;;  %v452_v18 = vrot.slane %v447_v12, %v451_v9  ;;  %v2526_v19 = vrot.slane %v447_v12, %v463_v10  ;;  %s1776_s15 = sshll.u32 %s2319_s3, 4  ;;  %s1777_s15 = int_to_ptr.vmem [resolvable:$true] %s1776_s15 }
  0x4d   :  { %v456_v22 = vrot.slane %v447_v12, %v455_v15  ;;  %s2280_s16 = scalar_lea.vmem %s1777_s15, 128  ;;  %p2285_p7 = scmp.lt.s32.totalorder %s1777_s15, %s1777_s15 }
  0x4e   :  { %p2281_p6 = scmp.ne.s32.totalorder %s1777_s15, %s2280_s16  ;;  %p2286_p8 = scmp.lt.s32.totalorder %s2280_s16, %s2280_s16 }
  0x4f   :  { %314 = vmatpush1.bf16.msra.mxu0 %v1968_v27  ;;  %387 = vmatpush1.bf16.msra.mxu1 %v1969_v28 }
  0x50   :  { %315 = vmatprep.subr.bf16.mxu0 %v1970_v29  ;;  %388 = vmatprep.subr.bf16.mxu1 %v1972_v30  ;;  %p2287_p9 = por %p2286_p8, %p2285_p7 }
  0x52   :  { %p2288_p10 = pnand %p2287_p9, %p2281_p6 }
  0x53   :  { %316 = vmatpush1.bf16.msra.mxu0 %v1974_v31  ;;  %389 = vmatpush1.bf16.msra.mxu1 %v1975_v32 }
  0x54   :  { %729 = vmatprep.subr.bf16.mxu0 %v2370_v33  ;;  %770 = vmatprep.subr.bf16.mxu1 %v2372_v34 }
  0x56   :  { %334 = vmatmul.mubr.bf16.vlgmr.msra.gmra.mxu0 %v1976_v35  ;;  %407 = vmatmul.mubr.bf16.vlgmr.msra.gmra.mxu1 %v1976_v35 }
  0x57   :  { %730 = vmatpush1.bf16.msra.mxu0 %v2374_v36  ;;  %771 = vmatpush1.bf16.msra.mxu1 %v2376_v37 }
  0x58   :  { %731 = vmatprep.subr.bf16.mxu0 %v2380_v38  ;;  %772 = vmatprep.subr.bf16.mxu1 %v2382_v39 }
  0x59   :  { %343 = vmatprep.mubr.bf16.mxu0 %v2907_v0  ;;  %416 = vmatprep.mubr.bf16.mxu1 %v2907_v0 }
  0x5b   :  { %732 = vmatpush1.bf16.msra.mxu0 %v2384_v40  ;;  %773 = vmatpush1.bf16.msra.mxu1 %v2388_v41 }
  0x5c   :  { %733 = vmatprep.subr.bf16.mxu0 %v2392_v42  ;;  %774 = vmatprep.subr.bf16.mxu1 %v2394_v43 }
  0x5e   :  { %344 = vmatmul.mubr.bf16.gmra.mxu0 %v1989_v44  ;;  %417 = vmatmul.mubr.bf16.gmra.mxu1 %v1989_v44 }
  0x5f   :  { %734 = vmatpush1.bf16.msra.mxu0 %v2398_v45  ;;  %775 = vmatpush1.bf16.msra.mxu1 %v2400_v46 }
  0x60   :  { %735 = vmatprep.subr.bf16.mxu0 %v2404_v47  ;;  %776 = vmatprep.subr.bf16.mxu1 %v2408_v48 }
  0x61   :  { %353 = vmatprep.mubr.bf16.mxu0 %v2907_v0  ;;  %426 = vmatprep.mubr.bf16.mxu1 %v2907_v0 }
  0x63   :  { %736 = vmatpush1.bf16.msra.mxu0 %v2410_v49  ;;  %777 = vmatpush1.bf16.msra.mxu1 %v2412_v50 }
  0x64   :  { %737 = vmatprep.subr.bf16.mxu0 %v2416_v51  ;;  %778 = vmatprep.subr.bf16.mxu1 %v2420_v53 }
  0x66   :  { %354 = vmatmul.mubr.bf16.gmra.mxu0 %v2002_v52  ;;  %427 = vmatmul.mubr.bf16.gmra.mxu1 %v2002_v52 }
  0x67   :  { %738 = vmatpush1.bf16.msra.mxu0 %v2424_v54  ;;  %779 = vmatpush1.bf16.msra.mxu1 %v2426_v55 }
  0x68   :  { %739 = vmatprep.subr.bf16.mxu0 %v2428_v56  ;;  %780 = vmatprep.subr.bf16.mxu1 %v2430_v57 }
  0x69   :  { %363 = vmatprep.mubr.bf16.mxu0 %v2907_v0  ;;  %436 = vmatprep.mubr.bf16.mxu1 %v2907_v0 }
  0x6b   :  { %740 = vmatpush1.bf16.msra.mxu0 %v2438_v58  ;;  %781 = vmatpush1.bf16.msra.mxu1 %v2440_v59 }
  0x6c   :  { %741 = vmatprep.subr.bf16.mxu0 %v2444_v60  ;;  %782 = vmatprep.subr.bf16.mxu1 %v2446_v61 }
  0x6e   :  { %364 = vmatmul.mubr.bf16.gmra.mxu0 %v2015_v62  ;;  %437 = vmatmul.mubr.bf16.gmra.mxu1 %v2015_v62 }
  0x6f   :  { %742 = vmatpush1.bf16.msra.mxu0 %v2452_v63  ;;  %783 = vmatpush1.bf16.msra.mxu1 %v2454_v1 }
  0x70   :  { %743 = vmatprep.subr.bf16.mxu0 %v2458_v2  ;;  %784 = vmatprep.subr.bf16.mxu1 %v2460_v3 }
  0x71   :  { %761 = vmatprep.mubr.bf16.mxu0 %v2907_v0  ;;  %802 = vmatprep.mubr.bf16.mxu1 %v2907_v0 }
  0x73   :  { %744 = vmatpush1.bf16.msra.mxu0 %v2464_v4  ;;  %785 = vmatpush1.bf16.msra.mxu1 %v2466_v5 }
  0x74   :  { %845 = vmatprep.subr.bf16.mxu0 %v2370_v33  ;;  %886 = vmatprep.subr.bf16.mxu1 %v2372_v34 }
  0x76   :  { %762 = vmatmul.mubr.bf16.vlgmr.msra.gmra.mxu0 %v2907_v0  ;;  %803 = vmatmul.mubr.bf16.vlgmr.msra.gmra.mxu1 %v2907_v0 }
  0x77   :  { %846 = vmatpush1.bf16.msra.mxu0 %v2374_v36  ;;  %887 = vmatpush1.bf16.msra.mxu1 %v2376_v37 }
  0x78   :  { %847 = vmatprep.subr.bf16.mxu0 %v2380_v38  ;;  %888 = vmatprep.subr.bf16.mxu1 %v2382_v39 }
  0x79   :  { %877 = vmatprep.mubr.bf16.mxu0 %v2907_v0  ;;  %918 = vmatprep.mubr.bf16.mxu1 %v2907_v0 }
  0x7b   :  { %848 = vmatpush1.bf16.msra.mxu0 %v2384_v40  ;;  %889 = vmatpush1.bf16.msra.mxu1 %v2388_v41 }
  0x7c   :  { %849 = vmatprep.subr.bf16.mxu0 %v2392_v42  ;;  %890 = vmatprep.subr.bf16.mxu1 %v2394_v43 }
  0x7f   :  { %850 = vmatpush1.bf16.msra.mxu0 %v2398_v45  ;;  %891 = vmatpush1.bf16.msra.mxu1 %v2400_v46 }
  0x80   :  { %851 = vmatprep.subr.bf16.mxu0 %v2404_v47  ;;  %892 = vmatprep.subr.bf16.mxu1 %v2408_v48 }
  0x83   :  { %852 = vmatpush1.bf16.msra.mxu0 %v2410_v49  ;;  %893 = vmatpush1.bf16.msra.mxu1 %v2412_v50 }
  0x84   :  { %853 = vmatprep.subr.bf16.mxu0 %v2416_v51  ;;  %894 = vmatprep.subr.bf16.mxu1 %v2420_v53 }
  0x87   :  { %854 = vmatpush1.bf16.msra.mxu0 %v2424_v54  ;;  %895 = vmatpush1.bf16.msra.mxu1 %v2426_v55 }
  0x88   :  { %855 = vmatprep.subr.bf16.mxu0 %v2428_v56  ;;  %896 = vmatprep.subr.bf16.mxu1 %v2430_v57 }
  0x8b   :  { %856 = vmatpush1.bf16.msra.mxu0 %v2438_v58  ;;  %897 = vmatpush1.bf16.msra.mxu1 %v2440_v59 }
  0x8c   :  { %857 = vmatprep.subr.bf16.mxu0 %v2444_v60  ;;  %898 = vmatprep.subr.bf16.mxu1 %v2446_v61 }
  0x8f   :  { %858 = vmatpush1.bf16.msra.mxu0 %v2452_v63  ;;  %899 = vmatpush1.bf16.msra.mxu1 %v2454_v1 }
  0x90   :  { %859 = vmatprep.subr.bf16.mxu0 %v2458_v2  ;;  %900 = vmatprep.subr.bf16.mxu1 %v2460_v3 }
  0x93   :  { %860 = vmatpush1.bf16.msra.mxu0 %v2464_v4  ;;  %901 = vmatpush1.bf16.msra.mxu1 %v2466_v5 }
  0x94   :  { %961 = vmatprep.subr.bf16.mxu0 %v2370_v33  ;;  %1002 = vmatprep.subr.bf16.mxu1 %v2372_v34 }
 0x116   :  { %v2513_v11 = vpop.f32.mrf.mxu0  ;;  %v2518_v13 = vpop.f32.mrf.mxu1 }
 0x118   :  { %v2522_v16 = vpop.f32.mrf.mxu0  ;;  %v2524_v17 = vpop.f32.mrf.mxu1 }
 0x11a   :  { %v339_v20 = vpop.f32.mrf.mxu0  ;;  %v412_v21 = vpop.f32.mrf.mxu1 }
 0x11b   :  { %v2528_v23 = vadd.f32 %v452_v18, %v339_v20  ;;  %v2531_v24 = vadd.f32 %v2520_v14, %v412_v21 }
 0x11c   :  { %v341_v25 = vpop.f32.mrf.mxu0  ;;  %v414_v26 = vpop.f32.mrf.mxu1 }
 0x11d   :  { %v2533_v27 = vadd.f32 %v456_v22, %v341_v25  ;;  %v2536_v28 = vadd.f32 %v2526_v19, %v414_v26 }
 0x11e   :  { %v345_v29 = vpop.f32.mrf.mxu0  ;;  %v418_v30 = vpop.f32.mrf.mxu1 }
 0x11f   :  { %v2538_v31 = vadd.f32 %v452_v18, %v345_v29  ;;  %v2541_v32 = vadd.f32 %v2520_v14, %v418_v30 }
 0x120   :  { %v347_v35 = vpop.f32.mrf.mxu0  ;;  %v420_v44 = vpop.f32.mrf.mxu1 }
 0x121   :  { %2909 = vst [vmem:[#allocation16_spill] sm:$0xff] %v2541_v32  ;;  %v2543_v52 = vadd.f32 %v456_v22, %v347_v35  ;;  %v2546_v62 = vadd.f32 %v2526_v19, %v420_v44 }
 0x122   :  { %v349_v7 = vpop.f32.mrf.mxu0  ;;  %v422_v8 = vpop.f32.mrf.mxu1 }
 0x123   :  { %v2548_v9 = vadd.f32 %v452_v18, %v349_v7  ;;  %v2551_v10 = vadd.f32 %v2520_v14, %v422_v8 }
 0x124   :  { %v351_v12 = vpop.f32.mrf.mxu0  ;;  %v424_v15 = vpop.f32.mrf.mxu1 }
 0x125   :  { %2910 = vst [vmem:[#allocation17_spill] sm:$0xff] %v2548_v9  ;;  %2911 = vst [vmem:[#allocation18_spill] sm:$0xff] %v2551_v10  ;;  %v2553_v20 = vadd.f32 %v456_v22, %v351_v12  ;;  %v2556_v21 = vadd.f32 %v2526_v19, %v424_v15 }
 0x126   :  { %v355_v25 = vpop.f32.mrf.mxu0  ;;  %v428_v26 = vpop.f32.mrf.mxu1 }
 0x127   :  { %2912 = vst [vmem:[#allocation19_spill] sm:$0xff] %v2553_v20  ;;  %2913 = vst [vmem:[#allocation20_spill] sm:$0xff] %v2556_v21  ;;  %v2558_v29 = vadd.f32 %v452_v18, %v355_v25  ;;  %v2561_v30 = vadd.f32 %v2520_v14, %v428_v26 }
 0x128   :  { %v357_v35 = vpop.f32.mrf.mxu0  ;;  %v430_v44 = vpop.f32.mrf.mxu1 }
 0x129   :  { %2914 = vst [vmem:[#allocation21_spill] sm:$0xff] %v2558_v29  ;;  %2915 = vst [vmem:[#allocation22_spill] sm:$0xff] %v2561_v30  ;;  %v2563_v7 = vadd.f32 %v456_v22, %v357_v35  ;;  %v2566_v8 = vadd.f32 %v2526_v19, %v430_v44 }
 0x12a   :  { %v359_v6 = vpop.f32.mrf.mxu0  ;;  %v432_v12 = vpop.f32.mrf.mxu1 }
 0x12b   :  { %2916 = vst [vmem:[#allocation23_spill] sm:$0xff] %v2563_v7  ;;  %2917 = vst [vmem:[#allocation24_spill] sm:$0xff] %v2566_v8  ;;  %v2568_v0 = vadd.f32 %v452_v18, %v359_v6  ;;  %v2571_v15 = vadd.f32 %v2520_v14, %v432_v12 }
 0x12c   :  { %v361_v10 = vpop.f32.mrf.mxu0  ;;  %v434_v25 = vpop.f32.mrf.mxu1 }
 0x12d   :  { %2918 = vst [vmem:[#allocation25_spill] sm:$0xff] %v2568_v0  ;;  %2919 = vst [vmem:[#allocation26_spill] sm:$0xff] %v2571_v15  ;;  %v2573_v29 = vadd.f32 %v456_v22, %v361_v10  ;;  %v2576_v26 = vadd.f32 %v2526_v19, %v434_v25 }
 0x12e   :  { %v365_v30 = vpop.f32.mrf.mxu0  ;;  %v438_v35 = vpop.f32.mrf.mxu1 }
 0x12f   :  { %2920 = vst [vmem:[#allocation27_spill] sm:$0xff] %v2573_v29  ;;  %2921 = vst [vmem:[#allocation28_spill] sm:$0xff] %v2576_v26  ;;  %v2578_v7 = vadd.f32 %v452_v18, %v365_v30  ;;  %v2581_v44 = vadd.f32 %v2520_v14, %v438_v35 }
 0x130   :  { %v367_v8 = vpop.f32.mrf.mxu0  ;;  %v440_v6 = vpop.f32.mrf.mxu1 }
 0x131   :  { %2922 = vst [vmem:[#allocation29_spill] sm:$0xff] %v2578_v7  ;;  %2923 = vst [vmem:[#allocation30_spill] sm:$0xff] %v2581_v44  ;;  %v2583_v0 = vadd.f32 %v456_v22, %v367_v8  ;;  %v2586_v12 = vadd.f32 %v2526_v19, %v440_v6  ;;  %v469_v7 = vadd.f32 %v452_v18, %v2513_v11 }
 0x132   :  { %v369_v15 = vpop.f32.mrf.mxu0  ;;  %v442_v10 = vpop.f32.mrf.mxu1  ;;  %v470_v6 = vadd.f32 %v456_v22, %v2522_v16 }
 0x133   :  { %2924 = vst [vmem:[#allocation31_spill] sm:$0xff] %v2583_v0  ;;  %2925 = vst [vmem:[#allocation32_spill] sm:$0xff] %v2586_v12  ;;  %v2588_v29 = vadd.f32 %v452_v18, %v369_v15  ;;  %v2591_v25 = vadd.f32 %v2520_v14, %v442_v10  ;;  %v472_v18 = vadd.f32 %v2526_v19, %v2524_v17 }
 0x134   :  { %v371_v26 = vpop.f32.mrf.mxu0  ;;  %v444_v30 = vpop.f32.mrf.mxu1 }
 0x135   :  { %2926 = vst [vmem:[#allocation33_spill] sm:$0xff] %v2588_v29  ;;  %2927 = vst [vmem:[#allocation34_spill] sm:$0xff] %v2591_v25  ;;  %v2594_v35 = vadd.f32 %v456_v22, %v371_v26  ;;  %v2597_v44 = vadd.f32 %v2526_v19, %v444_v30  ;;  %v471_v30 = vadd.f32 %v2520_v14, %v2518_v13 }
 0x136   :  { %v763_v8 = vpop.f32.mrf.mxu0  ;;  %v804_v0 = vpop.f32.mrf.mxu1 }
 0x137   :  { %v811_v12 = vadd.f32 %v763_v8, %v469_v7  ;;  %v813_v7 = vadd.f32 %v804_v0, %v471_v30 }
 0x138   :  { %v765_v21 = vpop.f32.mrf.mxu0  ;;  %v806_v15 = vpop.f32.mrf.mxu1 }
 0x139   :  { %v1855_v29 = vmul.f32 -1.442695, %v811_v12  ;;  %v812_v20 = vadd.f32 %v765_v21, %v470_v6  ;;  %v814_v26 = vadd.f32 %v806_v15, %v472_v18 }
 0x13a   :  { %v767_v10 = vpop.f32.mrf.mxu0  ;;  %v808_v25 = vpop.f32.mrf.mxu1 }
 0x13b   :  { %2036 = vpow2.f32 %v1855_v29  ;;  %v1856_v9 = vmul.f32 -1.442695, %v812_v20  ;;  %v1857_v16 = vmul.f32 -1.442695, %v814_v26  ;;  %v2928_v10 = vmov 0  }
 0x13c   :  { %v768_v32 = vpop.f32.mrf.mxu0  ;;  %v809_v11 = vpop.f32.mrf.mxu1 }
 0x13d   :  { %2038 = vpow2.f32 %v1856_v9 }
 0x13e   :  { %2040 = vpow2.f32 %v1857_v16 }
 0x148   :  { %v2037_v22 = vpop.eup %2036 }
 0x149   :  { %v818_v8 = vadd.f32 1.0, %v2037_v22 }
 0x14a   :  { %v2039_v12 = vpop.eup %2038 }
 0x14b   :  { %2042 = vrcp.f32 %v818_v8  ;;  %v824_v21 = vadd.f32 1.0, %v2039_v12  ;;  %v2041_v32 = vpop.eup %2040 }
 0x14c   :  { %2044 = vtanh.f32 %v813_v7  ;;  %v831_v25 = vadd.f32 1.0, %v2041_v32 }
 0x14d   :  { %2046 = vrcp.f32 %v824_v21 }
 0x14e   :  { %2048 = vrcp.f32 %v831_v25 }
 0x158   :  { %v2043_v20 = vpop.eup %2042 }
 0x159   :  { %v2045_v9 = vpop.eup %2044 }
 0x15a   :  { %v2047_v29 = vpop.eup %2046  ;;  %v835_v19 = vmul.f32 %v2045_v9, %v2043_v20 }
 0x15b   :  { %v834_v17 = vmul.f32 0.0, %v2047_v29  ;;  %v2049_v0 = vpop.eup %2048 }
 0x15d   :  { %v2604_v6 = vadd.f32 %v835_v19, %v834_v17 }
 0x15f   :  { %2050 = vtanh.f32 %v2604_v6 }
 0x16c   :  { %v2051_v13 = vpop.eup %2050 }
 0x16d   :  { %v838_v14 = vmul.f32 %v2051_v13, %v2049_v0 }
 0x16f   :  { %v844_v15 = vpack.c.bf16 %v838_v14, %v838_v14 }
 0x171   :  { %878 = vmatmul.mubr.bf16.vlgmr.msra.gmra.mxu0 %v844_v15  ;;  %919 = vmatmul.mubr.bf16.vlgmr.msra.gmra.mxu1 %v844_v15 }
 0x172   :  { %962 = vmatpush1.bf16.msra.mxu0 %v2374_v36  ;;  %1003 = vmatpush1.bf16.msra.mxu1 %v2376_v37 }
 0x173   :  { %963 = vmatprep.subr.bf16.mxu0 %v2380_v38  ;;  %1004 = vmatprep.subr.bf16.mxu1 %v2382_v39 }
 0x174   :  { %993 = vmatprep.mubr.bf16.mxu0 %v2928_v10  ;;  %1034 = vmatprep.mubr.bf16.mxu1 %v2928_v10 }
 0x176   :  { %964 = vmatpush1.bf16.msra.mxu0 %v2384_v40  ;;  %1005 = vmatpush1.bf16.msra.mxu1 %v2388_v41 }
 0x177   :  { %965 = vmatprep.subr.bf16.mxu0 %v2392_v42  ;;  %1006 = vmatprep.subr.bf16.mxu1 %v2394_v43 }
 0x17a   :  { %966 = vmatpush1.bf16.msra.mxu0 %v2398_v45  ;;  %1007 = vmatpush1.bf16.msra.mxu1 %v2400_v46 }
 0x17b   :  { %967 = vmatprep.subr.bf16.mxu0 %v2404_v47  ;;  %1008 = vmatprep.subr.bf16.mxu1 %v2408_v48 }
 0x17e   :  { %968 = vmatpush1.bf16.msra.mxu0 %v2410_v49  ;;  %1009 = vmatpush1.bf16.msra.mxu1 %v2412_v50 }
 0x17f   :  { %969 = vmatprep.subr.bf16.mxu0 %v2416_v51  ;;  %1010 = vmatprep.subr.bf16.mxu1 %v2420_v53 }
 0x182   :  { %970 = vmatpush1.bf16.msra.mxu0 %v2424_v54  ;;  %1011 = vmatpush1.bf16.msra.mxu1 %v2426_v55 }
 0x183   :  { %971 = vmatprep.subr.bf16.mxu0 %v2428_v56  ;;  %1012 = vmatprep.subr.bf16.mxu1 %v2430_v57 }
 0x186   :  { %972 = vmatpush1.bf16.msra.mxu0 %v2438_v58  ;;  %1013 = vmatpush1.bf16.msra.mxu1 %v2440_v59 }
 0x187   :  { %973 = vmatprep.subr.bf16.mxu0 %v2444_v60  ;;  %1014 = vmatprep.subr.bf16.mxu1 %v2446_v61 }
 0x18a   :  { %974 = vmatpush1.bf16.msra.mxu0 %v2452_v63  ;;  %1015 = vmatpush1.bf16.msra.mxu1 %v2454_v1 }
 0x18b   :  { %975 = vmatprep.subr.bf16.mxu0 %v2458_v2  ;;  %1016 = vmatprep.subr.bf16.mxu1 %v2460_v3 }
 0x18e   :  { %976 = vmatpush1.bf16.msra.mxu0 %v2464_v4  ;;  %1017 = vmatpush1.bf16.msra.mxu1 %v2466_v5 }
 0x18f   :  { %1077 = vmatprep.subr.bf16.mxu0 %v2370_v33  ;;  %1118 = vmatprep.subr.bf16.mxu1 %v2372_v34 }
 0x231   :  { %v879_v11 = vpop.f32.mrf.mxu0  ;;  %v920_v18 = vpop.f32.mrf.mxu1 }
 0x232   :  { %v927_v26 = vadd.f32 %v879_v11, %v2528_v23  ;;  %v929_v29 = vadd.f32 %v920_v18, %v2531_v24 }
 0x233   :  { %v881_v30 = vpop.f32.mrf.mxu0  ;;  %v922_v16 = vpop.f32.mrf.mxu1 }
 0x234   :  { %v1858_v22 = vmul.f32 -1.442695, %v927_v26  ;;  %v928_v7 = vadd.f32 %v881_v30, %v2533_v27  ;;  %v930_v9 = vadd.f32 %v922_v16, %v2536_v28 }
 0x235   :  { %v883_v8 = vpop.f32.mrf.mxu0  ;;  %v924_v12 = vpop.f32.mrf.mxu1 }
 0x236   :  { %2052 = vpow2.f32 %v1858_v22  ;;  %v1859_v21 = vmul.f32 -1.442695, %v928_v7  ;;  %v1860_v25 = vmul.f32 -1.442695, %v930_v9 }
 0x237   :  { %v884_v32 = vpop.f32.mrf.mxu0  ;;  %v925_v20 = vpop.f32.mrf.mxu1 }
 0x238   :  { %2054 = vpow2.f32 %v1859_v21 }
 0x239   :  { %2056 = vtanh.f32 %v929_v29 }
 0x23a   :  { %2058 = vpow2.f32 %v1860_v25 }
 0x243   :  { %v2053_v17 = vpop.eup %2052 }
 0x244   :  { %v934_v19 = vadd.f32 1.0, %v2053_v17 }
 0x245   :  { %v2055_v23 = vpop.eup %2054 }
 0x246   :  { %2060 = vrcp.f32 %v934_v19  ;;  %v940_v0 = vadd.f32 1.0, %v2055_v23  ;;  %v2057_v27 = vpop.eup %2056 }
 0x247   :  { %v2059_v13 = vpop.eup %2058 }
 0x248   :  { %2062 = vrcp.f32 %v940_v0  ;;  %v947_v26 = vadd.f32 1.0, %v2059_v13  ;;  %v2929_v0 = vld [vmem:[#allocation16_spill] sm:$0xff] }
 0x24a   :  { %2064 = vrcp.f32 %v947_v26 }
 0x253   :  { %v2061_v14 = vpop.eup %2060 }
 0x254   :  { %v951_v15 = vmul.f32 %v2061_v14, %v2057_v27 }
 0x255   :  { %v2063_v11 = vpop.eup %2062 }
 0x256   :  { %v950_v30 = vmul.f32 %v2063_v11, %v2604_v6 }
 0x257   :  { %v2065_v24 = vpop.eup %2064 }
 0x258   :  { %v2646_v28 = vadd.f32 %v951_v15, %v950_v30 }
 0x25a   :  { %2066 = vtanh.f32 %v2646_v28 }
 0x267   :  { %v2067_v18 = vpop.eup %2066 }
 0x268   :  { %v954_v16 = vmul.f32 %v2067_v18, %v2065_v24 }
 0x26a   :  { %v960_v22 = vpack.c.bf16 %v954_v16, %v954_v16 }
 0x26c   :  { %994 = vmatmul.mubr.bf16.vlgmr.msra.gmra.mxu0 %v960_v22  ;;  %1035 = vmatmul.mubr.bf16.vlgmr.msra.gmra.mxu1 %v960_v22 }
 0x26d   :  { %1078 = vmatpush1.bf16.msra.mxu0 %v2374_v36  ;;  %1119 = vmatpush1.bf16.msra.mxu1 %v2376_v37 }
 0x26e   :  { %1079 = vmatprep.subr.bf16.mxu0 %v2380_v38  ;;  %1120 = vmatprep.subr.bf16.mxu1 %v2382_v39 }
 0x26f   :  { %1109 = vmatprep.mubr.bf16.mxu0 %v2928_v10  ;;  %1150 = vmatprep.mubr.bf16.mxu1 %v2928_v10 }
 0x271   :  { %1080 = vmatpush1.bf16.msra.mxu0 %v2384_v40  ;;  %1121 = vmatpush1.bf16.msra.mxu1 %v2388_v41 }
 0x272   :  { %1081 = vmatprep.subr.bf16.mxu0 %v2392_v42  ;;  %1122 = vmatprep.subr.bf16.mxu1 %v2394_v43 }
 0x275   :  { %1082 = vmatpush1.bf16.msra.mxu0 %v2398_v45  ;;  %1123 = vmatpush1.bf16.msra.mxu1 %v2400_v46 }
 0x276   :  { %1083 = vmatprep.subr.bf16.mxu0 %v2404_v47  ;;  %1124 = vmatprep.subr.bf16.mxu1 %v2408_v48 }
 0x279   :  { %1084 = vmatpush1.bf16.msra.mxu0 %v2410_v49  ;;  %1125 = vmatpush1.bf16.msra.mxu1 %v2412_v50 }
 0x27a   :  { %1085 = vmatprep.subr.bf16.mxu0 %v2416_v51  ;;  %1126 = vmatprep.subr.bf16.mxu1 %v2420_v53 }
 0x27d   :  { %1086 = vmatpush1.bf16.msra.mxu0 %v2424_v54  ;;  %1127 = vmatpush1.bf16.msra.mxu1 %v2426_v55 }
 0x27e   :  { %1087 = vmatprep.subr.bf16.mxu0 %v2428_v56  ;;  %1128 = vmatprep.subr.bf16.mxu1 %v2430_v57 }
 0x281   :  { %1088 = vmatpush1.bf16.msra.mxu0 %v2438_v58  ;;  %1129 = vmatpush1.bf16.msra.mxu1 %v2440_v59 }
 0x282   :  { %1089 = vmatprep.subr.bf16.mxu0 %v2444_v60  ;;  %1130 = vmatprep.subr.bf16.mxu1 %v2446_v61 }
 0x285   :  { %1090 = vmatpush1.bf16.msra.mxu0 %v2452_v63  ;;  %1131 = vmatpush1.bf16.msra.mxu1 %v2454_v1 }
 0x286   :  { %1091 = vmatprep.subr.bf16.mxu0 %v2458_v2  ;;  %1132 = vmatprep.subr.bf16.mxu1 %v2460_v3 }
 0x289   :  { %1092 = vmatpush1.bf16.msra.mxu0 %v2464_v4  ;;  %1133 = vmatpush1.bf16.msra.mxu1 %v2466_v5 }
 0x28a   :  { %1193 = vmatprep.subr.bf16.mxu0 %v2370_v33  ;;  %1234 = vmatprep.subr.bf16.mxu1 %v2372_v34 }
 0x32c   :  { %v995_v6 = vpop.f32.mrf.mxu0  ;;  %v1036_v7 = vpop.f32.mrf.mxu1 }
 0x32d   :  { %v1043_v8 = vadd.f32 %v995_v6, %v2538_v31  ;;  %v1045_v27 = vadd.f32 %v1036_v7, %v2929_v0 }
 0x32e   :  { %v997_v12 = vpop.f32.mrf.mxu0  ;;  %v1038_v21 = vpop.f32.mrf.mxu1 }
 0x32f   :  { %v1861_v32 = vmul.f32 -1.442695, %v1043_v8  ;;  %v1044_v20 = vadd.f32 %v997_v12, %v2543_v52  ;;  %v1046_v23 = vadd.f32 %v1038_v21, %v2546_v62 }
 0x330   :  { %v999_v9 = vpop.f32.mrf.mxu0  ;;  %v1040_v29 = vpop.f32.mrf.mxu1 }
 0x331   :  { %2068 = vpow2.f32 %v1861_v32  ;;  %v1862_v25 = vmul.f32 -1.442695, %v1044_v20  ;;  %v1863_v13 = vmul.f32 -1.442695, %v1046_v23  ;;  %v2930_v32 = vld [vmem:[#allocation17_spill] sm:$0xff] }
 0x332   :  { %v1000_v17 = vpop.f32.mrf.mxu0  ;;  %v1041_v19 = vpop.f32.mrf.mxu1 }
 0x333   :  { %2070 = vpow2.f32 %v1862_v25  ;;  %v2931_v17 = vld [vmem:[#allocation19_spill] sm:$0xff] }
 0x334   :  { %2072 = vtanh.f32 %v1045_v27 }
 0x335   :  { %2074 = vpow2.f32 %v1863_v13 }
 0x33e   :  { %v2069_v14 = vpop.eup %2068 }
 0x33f   :  { %v1050_v15 = vadd.f32 1.0, %v2069_v14 }
 0x340   :  { %v2071_v31 = vpop.eup %2070 }
 0x341   :  { %2076 = vrcp.f32 %v1050_v15  ;;  %v1056_v11 = vadd.f32 1.0, %v2071_v31  ;;  %v2073_v52 = vpop.eup %2072  ;;  %v2932_v15 = vld [vmem:[#allocation20_spill] sm:$0xff]  ;;  %v2933_v31 = vld [vmem:[#allocation18_spill] sm:$0xff] }
 0x342   :  { %v2075_v26 = vpop.eup %2074 }
 0x343   :  { %2078 = vrcp.f32 %v1056_v11  ;;  %v1063_v16 = vadd.f32 1.0, %v2075_v26 }
 0x345   :  { %2080 = vrcp.f32 %v1063_v16 }
 0x34e   :  { %v2077_v30 = vpop.eup %2076 }
 0x34f   :  { %v1067_v24 = vmul.f32 %v2077_v30, %v2073_v52 }
 0x350   :  { %v2079_v18 = vpop.eup %2078 }
 0x351   :  { %v1066_v22 = vmul.f32 %v2079_v18, %v2646_v28 }
 0x352   :  { %v2081_v6 = vpop.eup %2080 }
 0x353   :  { %v2688_v62 = vadd.f32 %v1067_v24, %v1066_v22 }
 0x355   :  { %2082 = vtanh.f32 %v2688_v62 }
 0x362   :  { %v2083_v7 = vpop.eup %2082 }
 0x363   :  { %v1070_v8 = vmul.f32 %v2083_v7, %v2081_v6 }
 0x365   :  { %v1076_v12 = vpack.c.bf16 %v1070_v8, %v1070_v8 }
 0x367   :  { %1110 = vmatmul.mubr.bf16.vlgmr.msra.gmra.mxu0 %v1076_v12  ;;  %1151 = vmatmul.mubr.bf16.vlgmr.msra.gmra.mxu1 %v1076_v12 }
 0x368   :  { %1194 = vmatpush1.bf16.msra.mxu0 %v2374_v36  ;;  %1235 = vmatpush1.bf16.msra.mxu1 %v2376_v37 }
 0x369   :  { %1195 = vmatprep.subr.bf16.mxu0 %v2380_v38  ;;  %1236 = vmatprep.subr.bf16.mxu1 %v2382_v39 }
 0x36a   :  { %1225 = vmatprep.mubr.bf16.mxu0 %v2928_v10  ;;  %1266 = vmatprep.mubr.bf16.mxu1 %v2928_v10 }
 0x36c   :  { %1196 = vmatpush1.bf16.msra.mxu0 %v2384_v40  ;;  %1237 = vmatpush1.bf16.msra.mxu1 %v2388_v41 }
 0x36d   :  { %1197 = vmatprep.subr.bf16.mxu0 %v2392_v42  ;;  %1238 = vmatprep.subr.bf16.mxu1 %v2394_v43 }
 0x370   :  { %1198 = vmatpush1.bf16.msra.mxu0 %v2398_v45  ;;  %1239 = vmatpush1.bf16.msra.mxu1 %v2400_v46 }
 0x371   :  { %1199 = vmatprep.subr.bf16.mxu0 %v2404_v47  ;;  %1240 = vmatprep.subr.bf16.mxu1 %v2408_v48 }
 0x374   :  { %1200 = vmatpush1.bf16.msra.mxu0 %v2410_v49  ;;  %1241 = vmatpush1.bf16.msra.mxu1 %v2412_v50 }
 0x375   :  { %1201 = vmatprep.subr.bf16.mxu0 %v2416_v51  ;;  %1242 = vmatprep.subr.bf16.mxu1 %v2420_v53 }
 0x378   :  { %1202 = vmatpush1.bf16.msra.mxu0 %v2424_v54  ;;  %1243 = vmatpush1.bf16.msra.mxu1 %v2426_v55 }
 0x379   :  { %1203 = vmatprep.subr.bf16.mxu0 %v2428_v56  ;;  %1244 = vmatprep.subr.bf16.mxu1 %v2430_v57 }
 0x37c   :  { %1204 = vmatpush1.bf16.msra.mxu0 %v2438_v58  ;;  %1245 = vmatpush1.bf16.msra.mxu1 %v2440_v59 }
 0x37d   :  { %1205 = vmatprep.subr.bf16.mxu0 %v2444_v60  ;;  %1246 = vmatprep.subr.bf16.mxu1 %v2446_v61 }
 0x380   :  { %1206 = vmatpush1.bf16.msra.mxu0 %v2452_v63  ;;  %1247 = vmatpush1.bf16.msra.mxu1 %v2454_v1 }
 0x381   :  { %1207 = vmatprep.subr.bf16.mxu0 %v2458_v2  ;;  %1248 = vmatprep.subr.bf16.mxu1 %v2460_v3 }
 0x384   :  { %1208 = vmatpush1.bf16.msra.mxu0 %v2464_v4  ;;  %1249 = vmatpush1.bf16.msra.mxu1 %v2466_v5 }
 0x385   :  { %1309 = vmatprep.subr.bf16.mxu0 %v2370_v33  ;;  %1350 = vmatprep.subr.bf16.mxu1 %v2372_v34 }
 0x427   :  { %v1111_v28 = vpop.f32.mrf.mxu0  ;;  %v1152_v21 = vpop.f32.mrf.mxu1 }
 0x428   :  { %v1159_v20 = vadd.f32 %v1111_v28, %v2930_v32  ;;  %v1161_v34 = vadd.f32 %v1152_v21, %v2933_v31 }
 0x429   :  { %v1113_v9 = vpop.f32.mrf.mxu0  ;;  %v1154_v29 = vpop.f32.mrf.mxu1 }
 0x42a   :  { %v1864_v25 = vmul.f32 -1.442695, %v1159_v20  ;;  %v1160_v19 = vadd.f32 %v1113_v9, %v2931_v17  ;;  %v1162_v33 = vadd.f32 %v1154_v29, %v2932_v15 }
 0x42b   :  { %v1115_v23 = vpop.f32.mrf.mxu0  ;;  %v1156_v0 = vpop.f32.mrf.mxu1 }
 0x42c   :  { %2084 = vpow2.f32 %v1864_v25  ;;  %v1865_v27 = vmul.f32 -1.442695, %v1160_v19  ;;  %v1866_v11 = vmul.f32 -1.442695, %v1162_v33 }
 0x42d   :  { %v1116_v13 = vpop.f32.mrf.mxu0  ;;  %v1157_v14 = vpop.f32.mrf.mxu1 }
 0x42e   :  { %2086 = vpow2.f32 %v1865_v27 }
 0x42f   :  { %2088 = vtanh.f32 %v1161_v34 }
 0x430   :  { %2090 = vpow2.f32 %v1866_v11 }
 0x439   :  { %v2085_v52 = vpop.eup %2084 }
 0x43a   :  { %v1166_v26 = vadd.f32 1.0, %v2085_v52 }
 0x43b   :  { %v2087_v30 = vpop.eup %2086 }
 0x43c   :  { %2092 = vrcp.f32 %v1166_v26  ;;  %v1172_v24 = vadd.f32 1.0, %v2087_v30  ;;  %v2089_v18 = vpop.eup %2088  ;;  %v2779_v30 = vld [vmem:[#allocation8 + $0xe0] ss:$16 sps:$4 sm:$0xff]  }
 0x43d   :  { %v2091_v16 = vpop.eup %2090 }
 0x43e   :  { %2094 = vrcp.f32 %v1172_v24  ;;  %v1179_v8 = vadd.f32 1.0, %v2091_v16  ;;  %v2782_v24 = vld [vmem:[#allocation8 + $0xe8] ss:$16 sps:$4 sm:$0xff]   ;;  %v2788_v16 = vld [vmem:[#allocation8 + $0xcc] ss:$16 sps:$4 sm:$0xff]  }
 0x440   :  { %2096 = vrcp.f32 %v1179_v8  ;;  %v2802_v8 = vld [vmem:[#allocation8 + $0xac] ss:$16 sps:$4 sm:$0xff]  }
 0x449   :  { %v2093_v22 = vpop.eup %2092 }
 0x44a   :  { %v1183_v6 = vmul.f32 %v2093_v22, %v2089_v18  ;;  %v2785_v18 = vld [vmem:[#allocation8 + $0xc4] ss:$16 sps:$4 sm:$0xff]   ;;  %v2793_v22 = vld [vmem:[#allocation8 + $0xc0] ss:$16 sps:$4 sm:$0xff]  }
 0x44b   :  { %v2095_v7 = vpop.eup %2094 }
 0x44c   :  { %v1182_v12 = vmul.f32 %v2095_v7, %v2688_v62  ;;  %v2799_v7 = vld [vmem:[#allocation8 + $0xa4] ss:$16 sps:$4 sm:$0xff]  }
 0x44d   :  { %v2097_v21 = vpop.eup %2096 }
 0x44e   :  { %v2730_v28 = vadd.f32 %v1183_v6, %v1182_v12  ;;  %v2796_v6 = vld [vmem:[#allocation8 + $0xc8] ss:$16 sps:$4 sm:$0xff]   ;;  %v2805_v12 = vld [vmem:[#allocation8 + $0xa0] ss:$16 sps:$4 sm:$0xff]  }
 0x450   :  { %2098 = vtanh.f32 %v2730_v28 }
 0x45d   :  { %v2099_v32 = vpop.eup %2098 }
 0x45e   :  { %v1186_v20 = vmul.f32 %v2099_v32, %v2097_v21  ;;  %v2811_v21 = vld [vmem:[#allocation8 + $0x84] ss:$16 sps:$4 sm:$0xff]   ;;  %v2814_v32 = vld [vmem:[#allocation8 + $0x8c] ss:$16 sps:$4 sm:$0xff]  }
 0x460   :  { %v1192_v9 = vpack.c.bf16 %v1186_v20, %v1186_v20  ;;  %v2817_v20 = vld [vmem:[#allocation8 + $0x80] ss:$16 sps:$4 sm:$0xff]  }
 0x462   :  { %1226 = vmatmul.mubr.bf16.vlgmr.msra.gmra.mxu0 %v1192_v9  ;;  %1267 = vmatmul.mubr.bf16.vlgmr.msra.gmra.mxu1 %v1192_v9  ;;  %v2820_v9 = vld [vmem:[#allocation8 + $0x88] ss:$16 sps:$4 sm:$0xff]  }
 0x463   :  { %1310 = vmatpush1.bf16.msra.mxu0 %v2374_v36  ;;  %1351 = vmatpush1.bf16.msra.mxu1 %v2376_v37  ;;  %v2765_v36 = vld [vmem:[#allocation8 + $0xe4] ss:$16 sps:$4 sm:$0xff]   ;;  %v2768_v37 = vld [vmem:[#allocation8 + $0xec] ss:$16 sps:$4 sm:$0xff]  }
 0x464   :  { %1311 = vmatprep.subr.bf16.mxu0 %v2380_v38  ;;  %1352 = vmatprep.subr.bf16.mxu1 %v2382_v39 }
 0x465   :  { %1341 = vmatprep.mubr.bf16.mxu0 %v2928_v10  ;;  %1382 = vmatprep.mubr.bf16.mxu1 %v2928_v10 }
 0x467   :  { %1312 = vmatpush1.bf16.msra.mxu0 %v2384_v40  ;;  %1353 = vmatpush1.bf16.msra.mxu1 %v2388_v41  ;;  %v2934_v40 = vld [vmem:[#allocation21_spill] sm:$0xff] }
 0x468   :  { %1313 = vmatprep.subr.bf16.mxu0 %v2392_v42  ;;  %1354 = vmatprep.subr.bf16.mxu1 %v2394_v43 }
 0x46b   :  { %1314 = vmatpush1.bf16.msra.mxu0 %v2398_v45  ;;  %1355 = vmatpush1.bf16.msra.mxu1 %v2400_v46  ;;  %v2935_v46 = vld [vmem:[#allocation23_spill] sm:$0xff] }
 0x46c   :  { %1315 = vmatprep.subr.bf16.mxu0 %v2404_v47  ;;  %1356 = vmatprep.subr.bf16.mxu1 %v2408_v48 }
 0x46f   :  { %1316 = vmatpush1.bf16.msra.mxu0 %v2410_v49  ;;  %1357 = vmatpush1.bf16.msra.mxu1 %v2412_v50 }
 0x470   :  { %1317 = vmatprep.subr.bf16.mxu0 %v2416_v51  ;;  %1358 = vmatprep.subr.bf16.mxu1 %v2420_v53 }
 0x473   :  { %1318 = vmatpush1.bf16.msra.mxu0 %v2424_v54  ;;  %1359 = vmatpush1.bf16.msra.mxu1 %v2426_v55  ;;  %v2936_v54 = vld [vmem:[#allocation24_spill] sm:$0xff] }
 0x474   :  { %1319 = vmatprep.subr.bf16.mxu0 %v2428_v56  ;;  %1360 = vmatprep.subr.bf16.mxu1 %v2430_v57  ;;  %v2937_v56 = vld [vmem:[#allocation22_spill] sm:$0xff] }
 0x477   :  { %1320 = vmatpush1.bf16.msra.mxu0 %v2438_v58  ;;  %1361 = vmatpush1.bf16.msra.mxu1 %v2440_v59 }
 0x478   :  { %1321 = vmatprep.subr.bf16.mxu0 %v2444_v60  ;;  %1362 = vmatprep.subr.bf16.mxu1 %v2446_v61 }
 0x47b   :  { %1322 = vmatpush1.bf16.msra.mxu0 %v2452_v63  ;;  %1363 = vmatpush1.bf16.msra.mxu1 %v2454_v1 }
 0x47c   :  { %1323 = vmatprep.subr.bf16.mxu0 %v2458_v2  ;;  %1364 = vmatprep.subr.bf16.mxu1 %v2460_v3 }
 0x47f   :  { %1324 = vmatpush1.bf16.msra.mxu0 %v2464_v4  ;;  %1365 = vmatpush1.bf16.msra.mxu1 %v2466_v5 }
 0x480   :  { %1425 = vmatprep.subr.bf16.mxu0 %v2765_v36  ;;  %1466 = vmatprep.subr.bf16.mxu1 %v2768_v37 }
 0x522   :  { %v1227_v38 = vpop.f32.mrf.mxu0  ;;  %v1268_v39 = vpop.f32.mrf.mxu1 }
 0x523   :  { %v1275_v41 = vadd.f32 %v1227_v38, %v2934_v40  ;;  %v1277_v57 = vadd.f32 %v1268_v39, %v2937_v56  ;;  %v2823_v38 = vld [vmem:[#allocation8 + $0x64] ss:$16 sps:$4 sm:$0xff]   ;;  %v2826_v39 = vld [vmem:[#allocation8 + $0x6c] ss:$16 sps:$4 sm:$0xff]   ;;  %v2829_v40 = vld [vmem:[#allocation8 + $0x60] ss:$16 sps:$4 sm:$0xff]  }
 0x524   :  { %v1229_v42 = vpop.f32.mrf.mxu0  ;;  %v1270_v43 = vpop.f32.mrf.mxu1 }
 0x525   :  { %v1867_v45 = vmul.f32 -1.442695, %v1275_v41  ;;  %v1276_v47 = vadd.f32 %v1229_v42, %v2935_v46  ;;  %v1278_v55 = vadd.f32 %v1270_v43, %v2936_v54  ;;  %v2832_v41 = vld [vmem:[#allocation8 + $0x68] ss:$16 sps:$4 sm:$0xff]   ;;  %v2835_v42 = vld [vmem:[#allocation8 + $0x44] ss:$16 sps:$4 sm:$0xff]  }
 0x526   :  { %v1231_v48 = vpop.f32.mrf.mxu0  ;;  %v1272_v49 = vpop.f32.mrf.mxu1  ;;  %v2838_v43 = vld [vmem:[#allocation8 + $0x4c] ss:$16 sps:$4 sm:$0xff]  }
 0x527   :  { %2100 = vpow2.f32 %v1867_v45  ;;  %v1868_v50 = vmul.f32 -1.442695, %v1276_v47  ;;  %v1869_v62 = vmul.f32 -1.442695, %v1278_v55 }
 0x528   :  { %v1232_v51 = vpop.f32.mrf.mxu0  ;;  %v1273_v53 = vpop.f32.mrf.mxu1 }
 0x529   :  { %2102 = vpow2.f32 %v1868_v50  ;;  %v2941_v50 = vld [vmem:[#allocation26_spill] sm:$0xff] }
 0x52a   :  { %2104 = vtanh.f32 %v1277_v57 }
 0x52b   :  { %2106 = vpow2.f32 %v1869_v62 }
 0x534   :  { %v2101_v29 = vpop.eup %2100 }
 0x535   :  { %v1282_v25 = vadd.f32 1.0, %v2101_v29 }
 0x536   :  { %v2103_v17 = vpop.eup %2102 }
 0x537   :  { %2108 = vrcp.f32 %v1282_v25  ;;  %v1288_v19 = vadd.f32 1.0, %v2103_v17  ;;  %v2105_v23 = vpop.eup %2104 }
 0x538   :  { %v2107_v0 = vpop.eup %2106 }
 0x539   :  { %2110 = vrcp.f32 %v1288_v19  ;;  %v1295_v15 = vadd.f32 1.0, %v2107_v0 }
 0x53b   :  { %2112 = vrcp.f32 %v1295_v15 }
 0x544   :  { %v2109_v27 = vpop.eup %2108 }
 0x545   :  { %v1299_v13 = vmul.f32 %v2109_v27, %v2105_v23 }
 0x546   :  { %v2111_v14 = vpop.eup %2110 }
 0x547   :  { %v1298_v33 = vmul.f32 %v2111_v14, %v2730_v28  ;;  %v2808_v28 = vld [vmem:[#allocation8 + $0xa8] ss:$16 sps:$4 sm:$0xff]  }
 0x548   :  { %v2113_v34 = vpop.eup %2112 }
 0x549   :  { %v2776_v31 = vadd.f32 %v1299_v13, %v1298_v33  ;;  %v2191_v33 = vld [vmem:[#allocation8 + $0x48] ss:$16 sps:$4 sm:$0xff]  }
 0x54b   :  { %2114 = vtanh.f32 %v2776_v31 }
 0x558   :  { %v2115_v11 = vpop.eup %2114 }
 0x559   :  { %v1302_v52 = vmul.f32 %v2115_v11, %v2113_v34  ;;  %v2193_v34 = vld [vmem:[#allocation8 + $0x2c] ss:$16 sps:$4 sm:$0xff]   ;;  %v2194_v11 = vld [vmem:[#allocation8 + $0x20] ss:$16 sps:$4 sm:$0xff]  }
 0x55b   :  { %v1308_v26 = vpack.c.bf16 %v1302_v52, %v1302_v52  ;;  %v2195_v52 = vld [vmem:[#allocation8 + $0x28] ss:$16 sps:$4 sm:$0xff]  }
 0x55d   :  { %1342 = vmatmul.mubr.bf16.vlgmr.msra.gmra.mxu0 %v1308_v26  ;;  %1383 = vmatmul.mubr.bf16.vlgmr.msra.gmra.mxu1 %v1308_v26  ;;  %v2196_v26 = vld [vmem:[#allocation8 + $0x4] ss:$16 sps:$4 sm:$0xff]  }
 0x55e   :  { %1426 = vmatpush1.bf16.msra.mxu0 %v2779_v30  ;;  %1467 = vmatpush1.bf16.msra.mxu1 %v2782_v24 }
 0x55f   :  { %1427 = vmatprep.subr.bf16.mxu0 %v2785_v18  ;;  %1468 = vmatprep.subr.bf16.mxu1 %v2788_v16 }
 0x560   :  { %1457 = vmatprep.mubr.bf16.mxu0 %v2928_v10  ;;  %1498 = vmatprep.mubr.bf16.mxu1 %v2928_v10 }
 0x562   :  { %1428 = vmatpush1.bf16.msra.mxu0 %v2793_v22  ;;  %1469 = vmatpush1.bf16.msra.mxu1 %v2796_v6 }
 0x563   :  { %1429 = vmatprep.subr.bf16.mxu0 %v2799_v7  ;;  %1470 = vmatprep.subr.bf16.mxu1 %v2802_v8 }
 0x566   :  { %1430 = vmatpush1.bf16.msra.mxu0 %v2805_v12  ;;  %1471 = vmatpush1.bf16.msra.mxu1 %v2808_v28 }
 0x567   :  { %1431 = vmatprep.subr.bf16.mxu0 %v2811_v21  ;;  %1472 = vmatprep.subr.bf16.mxu1 %v2814_v32 }
 0x56a   :  { %1432 = vmatpush1.bf16.msra.mxu0 %v2817_v20  ;;  %1473 = vmatpush1.bf16.msra.mxu1 %v2820_v9 }
 0x56b   :  { %1433 = vmatprep.subr.bf16.mxu0 %v2823_v38  ;;  %1474 = vmatprep.subr.bf16.mxu1 %v2826_v39 }
 0x56e   :  { %1434 = vmatpush1.bf16.msra.mxu0 %v2829_v40  ;;  %1475 = vmatpush1.bf16.msra.mxu1 %v2832_v41 }
 0x56f   :  { %1435 = vmatprep.subr.bf16.mxu0 %v2835_v42  ;;  %1476 = vmatprep.subr.bf16.mxu1 %v2838_v43 }
 0x572   :  { %1436 = vmatpush1.bf16.msra.mxu0 %v2438_v58  ;;  %1477 = vmatpush1.bf16.msra.mxu1 %v2440_v59 }
 0x573   :  { %1437 = vmatprep.subr.bf16.mxu0 %v2444_v60  ;;  %1478 = vmatprep.subr.bf16.mxu1 %v2446_v61  ;;  %v2938_v60 = vld [vmem:[#allocation25_spill] sm:$0xff] }
 0x576   :  { %1438 = vmatpush1.bf16.msra.mxu0 %v2452_v63  ;;  %1479 = vmatpush1.bf16.msra.mxu1 %v2454_v1  ;;  %v2939_v1 = vld [vmem:[#allocation27_spill] sm:$0xff] }
 0x577   :  { %1439 = vmatprep.subr.bf16.mxu0 %v2458_v2  ;;  %1480 = vmatprep.subr.bf16.mxu1 %v2460_v3 }
 0x57a   :  { %1440 = vmatpush1.bf16.msra.mxu0 %v2464_v4  ;;  %1481 = vmatpush1.bf16.msra.mxu1 %v2466_v5  ;;  %v2940_v5 = vld [vmem:[#allocation28_spill] sm:$0xff] }
 0x57b   :  { %1541 = vmatprep.subr.bf16.mxu0 %v2765_v36  ;;  %1582 = vmatprep.subr.bf16.mxu1 %v2768_v37 }
 0x61d   :  { %v1343_v58 = vpop.f32.mrf.mxu0  ;;  %v1384_v59 = vpop.f32.mrf.mxu1 }
 0x61e   :  { %v1391_v61 = vadd.f32 %v1343_v58, %v2938_v60  ;;  %v1393_v37 = vadd.f32 %v1384_v59, %v2941_v50 }
 0x61f   :  { %v1345_v45 = vpop.f32.mrf.mxu0  ;;  %v1386_v63 = vpop.f32.mrf.mxu1 }
 0x620   :  { %v1870_v46 = vmul.f32 -1.442695, %v1391_v61  ;;  %v1392_v47 = vadd.f32 %v1345_v45, %v2939_v1  ;;  %v1394_v36 = vadd.f32 %v1386_v63, %v2940_v5 }
 0x621   :  { %v1347_v2 = vpop.f32.mrf.mxu0  ;;  %v1388_v48 = vpop.f32.mrf.mxu1 }
 0x622   :  { %2116 = vpow2.f32 %v1870_v46  ;;  %v1871_v3 = vmul.f32 -1.442695, %v1392_v47  ;;  %v1872_v51 = vmul.f32 -1.442695, %v1394_v36 }
 0x623   :  { %v1348_v4 = vpop.f32.mrf.mxu0  ;;  %v1389_v49 = vpop.f32.mrf.mxu1 }
 0x624   :  { %2118 = vpow2.f32 %v1871_v3 }
 0x625   :  { %2120 = vtanh.f32 %v1393_v37 }
 0x626   :  { %2122 = vpow2.f32 %v1872_v51  ;;  %v2028_v51 = vld [vmem:[#allocation9 + $0x38] sm:$0xff]  }
 0x62f   :  { %v2117_v53 = vpop.eup %2116 }
 0x630   :  { %v1398_v54 = vadd.f32 1.0, %v2117_v53  ;;  %v2317_v53 = vmov 0.0  }
 0x631   :  { %v2119_v55 = vpop.eup %2118 }
 0x632   :  { %2124 = vrcp.f32 %v1398_v54  ;;  %v1404_v56 = vadd.f32 1.0, %v2119_v55  ;;  %v2121_v57 = vpop.eup %2120  ;;  %v2029_v54 = vld [vmem:[#allocation9 + $0x30] sm:$0xff]   ;;  %v2030_v55 = vld [vmem:[#allocation9 + $0x28] sm:$0xff]  }
 0x633   :  { %v2123_v62 = vpop.eup %2122 }
 0x634   :  { %2126 = vrcp.f32 %v1404_v56  ;;  %v1411_v19 = vadd.f32 1.0, %v2123_v62  ;;  %v2031_v56 = vld [vmem:[#allocation9 + $0x20] sm:$0xff]   ;;  %v2033_v62 = vld [vmem:[#allocation9 + $0x10] sm:$0xff]  }
 0x636   :  { %2128 = vrcp.f32 %v1411_v19 }
 0x63f   :  { %v2125_v29 = vpop.eup %2124 }
 0x640   :  { %v1415_v25 = vmul.f32 %v2125_v29, %v2121_v57  ;;  %v2032_v57 = vld [vmem:[#allocation9 + $0x18] sm:$0xff]   ;;  %v2034_v29 = vld [vmem:[#allocation9 + $0x8] sm:$0xff]  }
 0x641   :  { %v2127_v17 = vpop.eup %2126 }
 0x642   :  { %v1414_v23 = vmul.f32 %v2127_v17, %v2776_v31  ;;  %v2192_v31 = vld [vmem:[#allocation8 + $0x24] ss:$16 sps:$4 sm:$0xff]  }
 0x643   :  { %v2129_v27 = vpop.eup %2128 }
 0x644   :  { %v2858_v0 = vadd.f32 %v1415_v25, %v1414_v23  ;;  %v2035_v25 = vld [vmem:[#allocation9] sm:$0xff]   ;;  %v2946_v23 = vld [vmem:[#allocation33_spill] sm:$0xff] }
 0x646   :  { %2130 = vtanh.f32 %v2858_v0 }
 0x653   :  { %v2131_v13 = vpop.eup %2130 }
 0x654   :  { %v1418_v14 = vmul.f32 %v2131_v13, %v2129_v27 }
 0x656   :  { %v1424_v15 = vpack.c.bf16 %v1418_v14, %v1418_v14 }
 0x658   :  { %1458 = vmatmul.mubr.bf16.vlgmr.msra.gmra.mxu0 %v1424_v15  ;;  %1499 = vmatmul.mubr.bf16.vlgmr.msra.gmra.mxu1 %v1424_v15 }
 0x659   :  { %1542 = vmatpush1.bf16.msra.mxu0 %v2779_v30  ;;  %1583 = vmatpush1.bf16.msra.mxu1 %v2782_v24  ;;  %v2197_v30 = vld [vmem:[#allocation8 + $0xc] ss:$16 sps:$4 sm:$0xff]   ;;  %v2198_v24 = vld [vmem:[#allocation8] ss:$16 sps:$4 sm:$0xff]  }
 0x65a   :  { %1543 = vmatprep.subr.bf16.mxu0 %v2785_v18  ;;  %1584 = vmatprep.subr.bf16.mxu1 %v2788_v16  ;;  %v2199_v18 = vld [vmem:[#allocation8 + $0x8] ss:$16 sps:$4 sm:$0xff]  }
 0x65b   :  { %1573 = vmatprep.mubr.bf16.mxu0 %v2928_v10  ;;  %1614 = vmatprep.mubr.bf16.mxu1 %v2928_v10  ;;  %v2190_v10 = vld [vmem:[#allocation8 + $0x40] ss:$16 sps:$4 sm:$0xff]  }
 0x65d   :  { %1544 = vmatpush1.bf16.msra.mxu0 %v2793_v22  ;;  %1585 = vmatpush1.bf16.msra.mxu1 %v2796_v6  ;;  %v2942_v6 = vld [vmem:[#allocation29_spill] sm:$0xff] }
 0x65e   :  { %1545 = vmatprep.subr.bf16.mxu0 %v2799_v7  ;;  %1586 = vmatprep.subr.bf16.mxu1 %v2802_v8 }
 0x661   :  { %1546 = vmatpush1.bf16.msra.mxu0 %v2805_v12  ;;  %1587 = vmatpush1.bf16.msra.mxu1 %v2808_v28 }
 0x662   :  { %1547 = vmatprep.subr.bf16.mxu0 %v2811_v21  ;;  %1588 = vmatprep.subr.bf16.mxu1 %v2814_v32  ;;  %v2943_v21 = vld [vmem:[#allocation31_spill] sm:$0xff] }
 0x665   :  { %1548 = vmatpush1.bf16.msra.mxu0 %v2817_v20  ;;  %1589 = vmatpush1.bf16.msra.mxu1 %v2820_v9 }
 0x666   :  { %1549 = vmatprep.subr.bf16.mxu0 %v2823_v38  ;;  %1590 = vmatprep.subr.bf16.mxu1 %v2826_v39 }
 0x669   :  { %1550 = vmatpush1.bf16.msra.mxu0 %v2829_v40  ;;  %1591 = vmatpush1.bf16.msra.mxu1 %v2832_v41  ;;  %v2944_v41 = vld [vmem:[#allocation32_spill] sm:$0xff] }
 0x66a   :  { %1551 = vmatprep.subr.bf16.mxu0 %v2835_v42  ;;  %1592 = vmatprep.subr.bf16.mxu1 %v2838_v43  ;;  %v2945_v43 = vld [vmem:[#allocation30_spill] sm:$0xff] }
 0x66d   :  { %1552 = vmatpush1.bf16.msra.mxu0 %v2190_v10  ;;  %1593 = vmatpush1.bf16.msra.mxu1 %v2191_v33 }
 0x66e   :  { %1553 = vmatprep.subr.bf16.mxu0 %v2192_v31  ;;  %1594 = vmatprep.subr.bf16.mxu1 %v2193_v34 }
 0x671   :  { %1554 = vmatpush1.bf16.msra.mxu0 %v2194_v11  ;;  %1595 = vmatpush1.bf16.msra.mxu1 %v2195_v52 }
 0x672   :  { %1555 = vmatprep.subr.bf16.mxu0 %v2196_v26  ;;  %1596 = vmatprep.subr.bf16.mxu1 %v2197_v30  ;;  %v2947_v26 = vld [vmem:[#allocation34_spill] sm:$0xff] }
 0x675   :  { %1556 = vmatpush1.bf16.msra.mxu0 %v2198_v24  ;;  %1597 = vmatpush1.bf16.msra.mxu1 %v2199_v18 }
 0x676   :  { %1896 = vmatprep.subr.bf16.mxu0 %v2317_v53 }
 0x718   :  { %v1459_v16 = vpop.f32.mrf.mxu0  ;;  %v1500_v22 = vpop.f32.mrf.mxu1 }
 0x719   :  { %v1507_v7 = vadd.f32 %v1459_v16, %v2942_v6  ;;  %v1509_v58 = vadd.f32 %v1500_v22, %v2945_v43 }
 0x71a   :  { %v1461_v8 = vpop.f32.mrf.mxu0  ;;  %v1502_v12 = vpop.f32.mrf.mxu1 }
 0x71b   :  { %v1873_v28 = vmul.f32 -1.442695, %v1507_v7  ;;  %v1508_v32 = vadd.f32 %v1461_v8, %v2943_v21  ;;  %v1510_v42 = vadd.f32 %v1502_v12, %v2944_v41 }
 0x71c   :  { %v1463_v20 = vpop.f32.mrf.mxu0  ;;  %v1504_v9 = vpop.f32.mrf.mxu1 }
 0x71d   :  { %2132 = vpow2.f32 %v1873_v28  ;;  %v1874_v38 = vmul.f32 -1.442695, %v1508_v32  ;;  %v1875_v59 = vmul.f32 -1.442695, %v1510_v42 }
 0x71e   :  { %v1464_v39 = vpop.f32.mrf.mxu0  ;;  %v1505_v40 = vpop.f32.mrf.mxu1 }
 0x71f   :  { %2134 = vpow2.f32 %v1874_v38  ;;  %v2948_v40 = vlaneseq }
 0x720   :  { %2136 = vtanh.f32 %v1509_v58 }
 0x721   :  { %2138 = vpow2.f32 %v1875_v59  ;;  %v1757_v41 = vand.u32 127, %v2948_v40 }
 0x723   :  { %vm1758_vm1 = vcmp.lt.s32.totalorder %v1757_v41, 4 }
 0x72a   :  { %v2133_v60 = vpop.eup %2132 }
 0x72b   :  { %v1514_v61 = vadd.f32 1.0, %v2133_v60 }
 0x72c   :  { %v2135_v45 = vpop.eup %2134 }
 0x72d   :  { %2140 = vrcp.f32 %v1514_v61  ;;  %v1520_v63 = vadd.f32 1.0, %v2135_v45  ;;  %v2137_v46 = vpop.eup %2136 }
 0x72e   :  { %v2139_v1 = vpop.eup %2138 }
 0x72f   :  { %2142 = vrcp.f32 %v1520_v63  ;;  %v1527_v3 = vadd.f32 1.0, %v2139_v1 }
 0x731   :  { %2144 = vrcp.f32 %v1527_v3 }
 0x73a   :  { %v2141_v47 = vpop.eup %2140 }
 0x73b   :  { %v1531_v2 = vmul.f32 %v2141_v47, %v2137_v46 }
 0x73c   :  { %v2143_v48 = vpop.eup %2142 }
 0x73d   :  { %v1530_v4 = vmul.f32 %v2143_v48, %v2858_v0 }
 0x73e   :  { %v2145_v5 = vpop.eup %2144 }
 0x73f   :  { %v2888_v49 = vadd.f32 %v1531_v2, %v1530_v4 }
 0x741   :  { %2146 = vtanh.f32 %v2888_v49 }
 0x74e   :  { %v2147_v36 = vpop.eup %2146 }
 0x74f   :  { %v1534_v50 = vmul.f32 %v2147_v36, %v2145_v5 }
 0x751   :  { %v1540_v37 = vpack.c.bf16 %v1534_v50, %v1534_v50 }
 0x753   :  { %1574 = vmatmul.mubr.bf16.vlgmr.msra.gmra.mxu0 %v1540_v37  ;;  %1615 = vmatmul.mubr.bf16.vlgmr.msra.gmra.mxu1 %v1540_v37 }
 0x754   :  { %1897 = vmatpush3.bf16.msra.mxu0 %v2028_v51  ;;  %1912 = vmatprep.mubr.msk.bf16.mxu0 %vm2318_vm0, %v2317_v53 }
 0x755   :  { %1898 = vmatprep.subr.bf16.mxu0 %v2317_v53 }
 0x758   :  { %1899 = vmatpush3.bf16.msra.mxu0 %v2029_v54 }
 0x759   :  { %1900 = vmatprep.subr.bf16.mxu0 %v2317_v53 }
 0x75c   :  { %1901 = vmatpush3.bf16.msra.mxu0 %v2030_v55 }
 0x75d   :  { %1902 = vmatprep.subr.bf16.mxu0 %v2317_v53 }
 0x760   :  { %1903 = vmatpush3.bf16.msra.mxu0 %v2031_v56 }
 0x761   :  { %1904 = vmatprep.subr.bf16.mxu0 %v2317_v53 }
 0x764   :  { %1905 = vmatpush3.bf16.msra.mxu0 %v2032_v57 }
 0x765   :  { %1906 = vmatprep.subr.bf16.mxu0 %v2317_v53 }
 0x768   :  { %1907 = vmatpush3.bf16.msra.mxu0 %v2033_v62 }
 0x769   :  { %1908 = vmatprep.subr.bf16.mxu0 %v2317_v53 }
 0x76c   :  { %1909 = vmatpush3.bf16.msra.mxu0 %v2034_v29 }
 0x76d   :  { %1910 = vmatprep.subr.bf16.mxu0 %v2317_v53 }
 0x770   :  { %1911 = vmatpush3.bf16.msra.mxu0 %v2035_v25 }
 0x813   :  { %v1575_v17 = vpop.f32.mrf.mxu0  ;;  %v1616_v19 = vpop.f32.mrf.mxu1 }
 0x814   :  { %v1623_v0 = vadd.f32 %v1575_v17, %v2946_v23  ;;  %v1625_v30 = vadd.f32 %v1616_v19, %v2947_v26 }
 0x815   :  { %v1577_v27 = vpop.f32.mrf.mxu0  ;;  %v1618_v13 = vpop.f32.mrf.mxu1 }
 0x816   :  { %v1876_v14 = vmul.f32 -1.442695, %v1623_v0  ;;  %v1624_v15 = vadd.f32 %v1577_v27, %v2594_v35  ;;  %v1626_v52 = vadd.f32 %v1618_v13, %v2597_v44 }
 0x817   :  { %v1579_v10 = vpop.f32.mrf.mxu0  ;;  %v1620_v33 = vpop.f32.mrf.mxu1 }
 0x818   :  { %2148 = vpow2.f32 %v1876_v14  ;;  %v1877_v31 = vmul.f32 -1.442695, %v1624_v15  ;;  %v1878_v24 = vmul.f32 -1.442695, %v1626_v52 }
 0x819   :  { %v1580_v34 = vpop.f32.mrf.mxu0  ;;  %v1621_v11 = vpop.f32.mrf.mxu1 }
 0x81a   :  { %2150 = vpow2.f32 %v1877_v31 }
 0x81b   :  { %2152 = vtanh.f32 %v1625_v30 }
 0x81c   :  { %2154 = vpow2.f32 %v1878_v24 }
 0x825   :  { %v2149_v18 = vpop.eup %2148 }
 0x826   :  { %v1630_v16 = vadd.f32 1.0, %v2149_v18 }
 0x827   :  { %v2151_v22 = vpop.eup %2150 }
 0x828   :  { %2156 = vrcp.f32 %v1630_v16  ;;  %v1636_v6 = vadd.f32 1.0, %v2151_v22  ;;  %v2153_v35 = vpop.eup %2152 }
 0x829   :  { %v2155_v7 = vpop.eup %2154 }
 0x82a   :  { %2158 = vrcp.f32 %v1636_v6  ;;  %v1643_v21 = vadd.f32 1.0, %v2155_v7 }
 0x82c   :  { %2160 = vrcp.f32 %v1643_v21 }
 0x835   :  { %v2157_v8 = vpop.eup %2156 }
 0x836   :  { %v1647_v12 = vmul.f32 %v2157_v8, %v2153_v35 }
 0x837   :  { %v2159_v28 = vpop.eup %2158 }
 0x838   :  { %v1646_v32 = vmul.f32 %v2159_v28, %v2888_v49 }
 0x839   :  { %v2161_v20 = vpop.eup %2160 }
 0x83a   :  { %v1648_v44 = vadd.f32 %v1647_v12, %v1646_v32 }
 0x83c   :  { %2162 = vtanh.f32 %v1648_v44 }
 0x849   :  { %v2163_v9 = vpop.eup %2162 }
 0x84a   :  { %v1650_v38 = vmul.f32 %v2163_v9, %v2161_v20 }
 0x84c   :  { %v1651_v39 = vpack.c.bf16 %v1650_v38, %v1650_v38 }
 0x84e   :  { %1913 = vmatmul.mubr.bf16.vlgmr.msra.gmra.mxu0 %v1651_v39 }
 0x90e   :  { %v1750_v42 = vpop.f32.mrf.mxu0 }
 0x90f   :  { %v1759_v43 = vsel %vm1758_vm1, %v1750_v42, -1e+30 }
 0x910   :  { %1760 = vmax.xlane.f32.xlu0 %v1759_v43  ;;  %v1914_v58 = vpop.f32.mrf.mxu0 }
 0x912   :  { %v1753_v59 = vpop.f32.mrf.mxu0 }
 0x914   :  { %v1915_v60 = vpop.f32.mrf.mxu0 }
 0x999   :  { %v1761_v61 = vpop.xlane.xlu0 %1760 }
 0x99a   :  { %v1762_v45 = vsub.f32 %v1759_v43, %v1761_v61 }
 0x99c   :  { %v1763_v63 = vmul.f32 1.442695, %v1762_v45 }
 0x99e   :  { %2164 = vpow2.f32 %v1763_v63 }
 0x9ab   :  { %v2165_v46 = vpop.eup %2164 }
 0x9ac   :  { %1765 = vadd.xlane.f32.xlu0 %v2165_v46 }
 0xa35   :  { %v1766_v1 = vpop.xlane.xlu0 %1765 }
 0xa36   :  { %2166 = vrcp.f32 %v1766_v1 }
 0xa43   :  { %v2167_v47 = vpop.eup %2166 }
 0xa44   :  { %v1768_v2 = vmul.f32 %v2167_v47, %v2165_v46 }
 0xa46   :  { %1769 = vst [vmem:[#allocation11] sm:$0xff] %v1768_v2 }
 0xa47   :  { %2291 = shalt.err (!%p2288_p10)
}
 0xa48   :  { %1779 = dma.vmem_to_hbm [thread:$0]  %s1777_s15, 128, %s2905_s5, [#allocation5]  }
 0xa49   :  { %2306 = dma.done.wait [#allocation5], 128  }
 0xa4a   :  { %2307 = vsyncadd [#allocation5], 4294967168 }
 0xa4b   :  { %1783 = vsyncpa [#allocation4], 1 }
 0xa4c   :  { %1784 = vsyncpa [#allocation7], 1 }
 0xa4d   :  { %1785 = vsyncpa [#allocation10], 1 }
 0xa4e   :  { %1786 = vsyncpa [#allocation5], 1 }

</bundles_post_ra>
